<compile_context>
chip_gen: v7x
topology: tpu7x:2x2x1
jax: 0.10.0
libtpu: 0.0.40
codegen_flags: <defaults>
</compile_context>

<pallas_src>
import functools
import math

import jax
import jax.numpy as jnp
from jax import lax
from jax.experimental import pallas as pl
from jax.experimental.pallas import tpu as pltpu

# Explicit scoped-VMEM budget: safe on v5e/v6e (128 MiB physical) and v7x
# (64 MiB physical).  For ViT-L/H-class weights on v7x, re-derive tm / keep
# this <= ~48 MiB (full-N bf16 weight tiles get large).
_VMEM_LIMIT = 32 * 1024 * 1024
_LN_EPS = 1e-6                   # timm ViT LayerNorm eps


# ----------------------------- Pallas kernels -----------------------------

def _fused_matmul_kernel(*refs, has_ln, has_resid, activation, eps):
    it = iter(refs)
    x_ref = next(it)
    if has_ln:
        g_ref = next(it)
        bln_ref = next(it)
    w_ref = next(it)
    bias_ref = next(it)
    r_ref = next(it) if has_resid else None
    o_ref = next(it)

    if has_ln:
        x = x_ref[...].astype(jnp.float32)
        mu = jnp.mean(x, axis=-1, keepdims=True)
        xc = x - mu
        var = jnp.mean(xc * xc, axis=-1, keepdims=True)
        x = xc * lax.rsqrt(var + eps) * g_ref[...] + bln_ref[...]
        xb = x.astype(jnp.bfloat16)
    else:
        xb = x_ref[...].astype(jnp.bfloat16)

    y = jnp.dot(xb, w_ref[...], preferred_element_type=jnp.float32)
    y = y + bias_ref[...]
    if activation == "gelu":
        # TODO(synk): PyTorch nn.GELU defaults to the exact erf form; using the
        # tanh approximation here (EUP-friendly, hides under MXU slack).
        c = math.sqrt(2.0 / math.pi)
        y = 0.5 * y * (1.0 + jnp.tanh(c * (y + 0.044715 * y * y * y)))
    if has_resid:
        y = y + r_ref[...].astype(jnp.float32)
    o_ref[...] = y.astype(o_ref.dtype)


def fused_matmul(x, w, b, *, ln_params=None, residual=None, activation=None,
                 out_dtype=jnp.float32, tm=256):
    """(M,K)@(K,N)+bias with optional fused LN prologue / GELU / residual.

    Full-N tiling (grid is 1-D over M): the weight index_map is constant so the
    (K,N) bf16 weight is DMA'd from HBM once per call, the LN prologue runs
    once per row, and the (tm, N) output store is lane-dense.  MXU operands are
    bf16 with f32 accumulation.
    """
    M, K = x.shape
    N = w.shape[1]
    # v7x has 2 TensorCores: guarantee >= 2 M tiles at small batch.
    if M <= 256:
        tm = 128
    tm = min(tm, M)
    grid = (pl.cdiv(M, tm),)

    in_specs = [pl.BlockSpec((tm, K), lambda i: (i, 0))]
    args = [x]
    bytes_accessed = x.size * x.dtype.itemsize
    if ln_params is not None:
        g, bb = ln_params
        in_specs += [pl.BlockSpec((1, K), lambda i: (0, 0)),
                     pl.BlockSpec((1, K), lambda i: (0, 0))]
        args += [g.reshape(1, K).astype(jnp.float32),
                 bb.reshape(1, K).astype(jnp.float32)]
        bytes_accessed += 2 * K * 4
    in_specs += [pl.BlockSpec((K, N), lambda i: (0, 0)),
                 pl.BlockSpec((1, N), lambda i: (0, 0))]
    args += [w.astype(jnp.bfloat16), b.reshape(1, N).astype(jnp.float32)]
    bytes_accessed += K * N * 2 + N * 4
    if residual is not None:
        in_specs += [pl.BlockSpec((tm, N), lambda i: (i, 0))]
        args += [residual]
        bytes_accessed += residual.size * residual.dtype.itemsize
    bytes_accessed += M * N * jnp.dtype(out_dtype).itemsize

    kernel = functools.partial(
        _fused_matmul_kernel,
        has_ln=ln_params is not None,
        has_resid=residual is not None,
        activation=activation,
        eps=_LN_EPS,
    )
    cost = pl.CostEstimate(
        flops=int(2 * M * K * N),
        transcendentals=int(M * N if activation == "gelu" else 0),
        bytes_accessed=int(bytes_accessed),
    )
    return pl.pallas_call(
        kernel,
        out_shape=jax.ShapeDtypeStruct((M, N), out_dtype),
        grid=grid,
        in_specs=in_specs,
        out_specs=pl.BlockSpec((tm, N), lambda i: (i, 0)),
        compiler_params=pltpu.CompilerParams(
            dimension_semantics=("parallel",),
            vmem_limit_bytes=_VMEM_LIMIT),
        cost_estimate=cost,
    )(*args)


def _attention_proj_kernel(q_ref, k_ref, v_ref, wp_ref, bp_ref, r_ref, o_ref,
                           *, heads):
    """Per-batch multi-head attention + fused output projection + residual.

    q/k/v blocks: (1, H, T, Dh) bf16 (softmax scale already folded into the q
    columns of the qkv weights).  Output: (1, T, D) f32 residual stream.
    """
    q = q_ref[0]            # (H, T, Dh)
    k = k_ref[0]
    v = v_ref[0]

    # scores (H, T, T): batched dot_general over heads, no explicit transpose.
    s = lax.dot_general(q, k, (((2,), (2,)), ((0,), (0,))),
                        preferred_element_type=jnp.float32)
    m = jnp.max(s, axis=-1, keepdims=True)
    p = jnp.exp(s - m)
    denom = jnp.sum(p, axis=-1, keepdims=True)
    p = p * pl.reciprocal(denom, approx=True)

    pv = lax.dot_general(p.astype(jnp.bfloat16), v, (((2,), (1,)), ((0,), (0,))),
                         preferred_element_type=jnp.float32)   # (H, T, Dh)
    pvb = pv.astype(jnp.bfloat16)

    # Fused output projection, accumulated per head (avoids lane-concat of the
    # per-head outputs): attn @ Wp == sum_h o_h @ Wp[h].
    acc = r_ref[0].astype(jnp.float32) + bp_ref[...].astype(jnp.float32)
    for h in range(heads):                    # static unroll; MXU work hides
        acc = acc + jnp.dot(pvb[h], wp_ref[h],
                            preferred_element_type=jnp.float32)
    o_ref[0] = acc.astype(o_ref.dtype)


def attention_proj(q, k, v, proj_w, proj_b, residual):
    """q/k/v: (B, H, T, Dh) bf16 heads-major; residual: (B, T, D) f32.

    Returns the updated residual stream (B, T, D) f32 = attn-proj + residual.
    One grid step per batch element ('parallel' for v7x megacore at B >= 2).
    """
    B, H, T, Dh = q.shape
    D = H * Dh
    wp = proj_w.reshape(H, Dh, D).astype(jnp.bfloat16)
    bp = proj_b.reshape(1, D).astype(jnp.float32)
    kernel = functools.partial(_attention_proj_kernel, heads=H)
    cost = pl.CostEstimate(
        flops=int(4 * B * H * T * T * Dh + 2 * B * T * D * D),
        transcendentals=int(B * H * T * T),
        bytes_accessed=int(3 * q.size * 2 + wp.size * 2
                           + residual.size * 4 + B * T * D * 4),
    )
    return pl.pallas_call(
        kernel,
        out_shape=jax.ShapeDtypeStruct((B, T, D), jnp.float32),
        grid=(B,),
        in_specs=[pl.BlockSpec((1, H, T, Dh), lambda b: (b, 0, 0, 0)),
                  pl.BlockSpec((1, H, T, Dh), lambda b: (b, 0, 0, 0)),
                  pl.BlockSpec((1, H, T, Dh), lambda b: (b, 0, 0, 0)),
                  pl.BlockSpec((H, Dh, D), lambda b: (0, 0, 0)),
                  pl.BlockSpec((1, D), lambda b: (0, 0)),
                  pl.BlockSpec((1, T, D), lambda b: (b, 0, 0))],
        out_specs=pl.BlockSpec((1, T, D), lambda b: (b, 0, 0)),
        compiler_params=pltpu.CompilerParams(
            dimension_semantics=("parallel",),
            vmem_limit_bytes=_VMEM_LIMIT),
        cost_estimate=cost,
    )(q, k, v, wp, bp, residual)


# ---------------------- synthetic ViT params / forward ----------------------

def init_params(key, *, in_chans, patch, num_patches, embed_dim, depth, heads,
                mlp_dim, num_classes):
    keys = iter(jax.random.split(key, 8 + depth * 8))

    def nrm(shape):
        return 0.02 * jax.random.normal(next(keys), shape, jnp.float32)

    patch_dim = in_chans * patch * patch
    scale = (embed_dim // heads) ** -0.5

    params = {
        # Matmul weights stored in bf16 (MXU operands); biases/LN params in f32.
        "patch_w": nrm((patch_dim, embed_dim)).astype(jnp.bfloat16),
        "patch_b": jnp.zeros((embed_dim,), jnp.float32),
        "cls": nrm((1, 1, embed_dim)),
        "pos": nrm((1, num_patches + 1, embed_dim)),
        "ln_g": jnp.ones((embed_dim,), jnp.float32),
        "ln_b": jnp.zeros((embed_dim,), jnp.float32),
        "head_w": nrm((embed_dim, num_classes)).astype(jnp.bfloat16),
        "head_b": jnp.zeros((num_classes,), jnp.float32),
        "blocks": [],
    }
    for _ in range(depth):
        # Fold the softmax scale 1/sqrt(Dh) into the q columns of qkv_w / qkv_b
        # at parameter-prep time (zero runtime cost inside the kernels).
        qkv_w = nrm((embed_dim, 3 * embed_dim))
        qkv_w = qkv_w.at[:, :embed_dim].multiply(scale)
        qkv_b = jnp.zeros((3 * embed_dim,), jnp.float32)
        qkv_b = qkv_b.at[:embed_dim].multiply(scale)
        params["blocks"].append({
            "ln1_g": jnp.ones((embed_dim,), jnp.float32),
            "ln1_b": jnp.zeros((embed_dim,), jnp.float32),
            "qkv_w": qkv_w.astype(jnp.bfloat16),
            "qkv_b": qkv_b,
            "proj_w": nrm((embed_dim, embed_dim)).astype(jnp.bfloat16),
            "proj_b": jnp.zeros((embed_dim,), jnp.float32),
            "ln2_g": jnp.ones((embed_dim,), jnp.float32),
            "ln2_b": jnp.zeros((embed_dim,), jnp.float32),
            "fc1_w": nrm((embed_dim, mlp_dim)).astype(jnp.bfloat16),
            "fc1_b": jnp.zeros((mlp_dim,), jnp.float32),
            "fc2_w": nrm((mlp_dim, embed_dim)).astype(jnp.bfloat16),
            "fc2_b": jnp.zeros((embed_dim,), jnp.float32),
        })
    return params


def timm_model_forward(params, x, *, patch, heads, norm=False):
    """Equivalent of TimmModel.forward(x, norm): ViT logits (+ optional L2 norm)."""
    B, C, H, W = x.shape
    Hp, Wp = H // patch, W // patch
    Np = Hp * Wp
    D = params["patch_w"].shape[1]
    Dh = D // heads
    T = Np + 1

    # Patch embedding (== Conv2d(kernel=stride=patch) in NCHW) as a fused matmul.
    patches = x.reshape(B, C, Hp, patch, Wp, patch)
    patches = patches.transpose(0, 2, 4, 1, 3, 5).reshape(B * Np, C * patch * patch)
    tok = fused_matmul(patches.astype(jnp.bfloat16), params["patch_w"],
                       params["patch_b"], out_dtype=jnp.float32)
    tok = tok.reshape(B, Np, D)

    # cls token + positional embedding (small JAX glue under jit).
    cls = jnp.broadcast_to(params["cls"], (B, 1, D))
    seq = jnp.concatenate([cls, tok], axis=1) + params["pos"]   # (B, T, D) f32
    # NOTE: keeping the residual stream f32; switching it to bf16 would halve
    # HBM traffic on v5e at a small accuracy cost.

    for blk in params["blocks"]:
        seq2d = seq.reshape(B * T, D)
        # --- attention: LN1+QKV fused; attention + proj + residual fused ---
        qkv = fused_matmul(seq2d, blk["qkv_w"], blk["qkv_b"],
                           ln_params=(blk["ln1_g"], blk["ln1_b"]),
                           out_dtype=jnp.bfloat16)
        # heads-major layout (wrapper-side layout plumbing -> lane-dense kernel).
        qkv = qkv.reshape(B, T, 3, heads, Dh).transpose(2, 0, 3, 1, 4)
        seq = attention_proj(qkv[0], qkv[1], qkv[2],
                             blk["proj_w"], blk["proj_b"], seq)

        # --- MLP: LN2+fc1+GELU fused, fc2+residual fused ---
        seq2d = seq.reshape(B * T, D)
        h1 = fused_matmul(seq2d, blk["fc1_w"], blk["fc1_b"],
                          ln_params=(blk["ln2_g"], blk["ln2_b"]),
                          activation="gelu", out_dtype=jnp.bfloat16)
        seq2d = fused_matmul(h1, blk["fc2_w"], blk["fc2_b"],
                             residual=seq2d, out_dtype=jnp.float32)
        seq = seq2d.reshape(B, T, D)

    # Final LayerNorm + classifier head + optional L2-norm in plain XLA:
    # M = batch is tiny and num_classes is not lane-aligned, so a Pallas kernel
    # would only emit masked partial stores.  cls-token pooling; LN is per-token.
    cls_tok = seq[:, 0, :]
    mu = jnp.mean(cls_tok, axis=-1, keepdims=True)
    xc = cls_tok - mu
    var = jnp.mean(xc * xc, axis=-1, keepdims=True)
    ln_cls = xc * lax.rsqrt(var + _LN_EPS) * params["ln_g"] + params["ln_b"]
    logits = ln_cls @ params["head_w"].astype(jnp.float32) + params["head_b"]

    if norm:
        n = jnp.sqrt(jnp.sum(logits * logits, axis=-1, keepdims=True))
        logits = logits / jnp.maximum(n, 1e-12)
    return logits


# --------------------------------- main ------------------------------------

if __name__ == "__main__":
    # Small synthetic ViT config (mirrors vit_*_patch16 structure at toy scale).
    B, C, HW = 2, 3, 32
    PATCH = 16
    EMBED = 32
    DEPTH = 2
    HEADS = 4
    MLP = 4 * EMBED
    NUM_CLASSES = 10
    NUM_PATCHES = (HW // PATCH) * (HW // PATCH)

    key = jax.random.PRNGKey(0)
    pkey, xkey = jax.random.split(key)
    params = init_params(pkey, in_chans=C, patch=PATCH, num_patches=NUM_PATCHES,
                         embed_dim=EMBED, depth=DEPTH, heads=HEADS,
                         mlp_dim=MLP, num_classes=NUM_CLASSES)

    # NCHW input, like the PyTorch module.
    x = jax.random.normal(xkey, (B, C, HW, HW), jnp.float32)

    fwd = jax.jit(functools.partial(timm_model_forward, patch=PATCH,
                                    heads=HEADS, norm=False))
    fwd_norm = jax.jit(functools.partial(timm_model_forward, patch=PATCH,
                                         heads=HEADS, norm=True))

    logits = fwd(params, x)
    logits_n = fwd_norm(params, x)
    jax.block_until_ready((logits, logits_n))

    assert logits.shape == (B, NUM_CLASSES)
    assert logits_n.shape == (B, NUM_CLASSES)
    assert bool(jnp.all(jnp.isfinite(logits))) and bool(jnp.all(jnp.isfinite(logits_n)))
    print("KERNEL_OK")
</pallas_src>

<mosaic_0001>
module attributes {stable_mosaic.version = 11 : i64} {
  func.func @_fused_matmul_kernel(%arg0: i32, %arg1: memref<8x768xbf16, #tpu.memory_space<vmem>>, %arg2: memref<768x32xbf16, #tpu.memory_space<vmem>>, %arg3: memref<1x32xf32, #tpu.memory_space<vmem>>, %arg4: memref<8x32xf32, #tpu.memory_space<vmem>>) attributes {dimension_semantics = [#tpu.dimension_semantics<parallel>], iteration_bounds = array<i64: 1>, scalar_prefetch = 0 : i64, scratch_operands = 0 : i64, tpu.core_type = #tpu.core_type<tc>, window_params = [{transform_indices = @transform_0, window_bounds = array<i64: 8, 768>}, {pipeline_mode = #tpu.pipeline_mode<synchronous>, transform_indices = @transform_1, window_bounds = array<i64: 768, 32>}, {pipeline_mode = #tpu.pipeline_mode<synchronous>, transform_indices = @transform_2, window_bounds = array<i64: 1, 32>}, {transform_indices = @transform_3, window_bounds = array<i64: 8, 32>}]} {
    %c0 = arith.constant 0 : index
    %c0_0 = arith.constant 0 : index
    %0 = vector.load %arg1[%c0, %c0_0] : memref<8x768xbf16, #tpu.memory_space<vmem>>, vector<8x768xbf16>
    %c0_1 = arith.constant 0 : index
    %c0_2 = arith.constant 0 : index
    %1 = vector.load %arg2[%c0_1, %c0_2] : memref<768x32xbf16, #tpu.memory_space<vmem>>, vector<768x32xbf16>
    %cst = arith.constant dense<0.000000e+00> : vector<8x32xf32>
    %2 = tpu.matmul %0, %1, %cst {dimension_numbers = #tpu.dot_dimension_numbers<[1], [0], [0], [1], [0, 0, 1, 1], [], []>} : vector<8x768xbf16>, vector<768x32xbf16>, vector<8x32xf32> -> vector<8x32xf32>
    %c0_3 = arith.constant 0 : index
    %c0_4 = arith.constant 0 : index
    %3 = vector.load %arg3[%c0_3, %c0_4] : memref<1x32xf32, #tpu.memory_space<vmem>>, vector<1x32xf32>
    %4 = vector.broadcast %3 : vector<1x32xf32> to vector<8x32xf32>
    %5 = arith.addf %2, %4 : vector<8x32xf32>
    %c0_5 = arith.constant 0 : index
    %c0_6 = arith.constant 0 : index
    %6 = vector.load %arg4[%c0_5, %c0_6] : memref<8x32xf32, #tpu.memory_space<vmem>>, vector<8x32xf32>
    tpu.vector_store %arg4[%c0_5, %c0_6], %5 {strides = array<i32>} : memref<8x32xf32, #tpu.memory_space<vmem>>, vector<8x32xf32>,
    return
  }
  func.func @transform_0(%arg0: i32) -> (i32, i32) {
    %c0_i32 = arith.constant 0 : i32
    %c0_i32_0 = arith.constant 0 : i32
    return %arg0, %c0_i32 : i32, i32
  }
  func.func @transform_1(%arg0: i32) -> (i32, i32) {
    %c0_i32 = arith.constant 0 : i32
    %c0_i32_0 = arith.constant 0 : i32
    %c0_i32_1 = arith.constant 0 : i32
    return %c0_i32, %c0_i32_0 : i32, i32
  }
  func.func @transform_2(%arg0: i32) -> (i32, i32) {
    %c0_i32 = arith.constant 0 : i32
    %c0_i32_0 = arith.constant 0 : i32
    %c0_i32_1 = arith.constant 0 : i32
    return %c0_i32, %c0_i32_0 : i32, i32
  }
  func.func @transform_3(%arg0: i32) -> (i32, i32) {
    %c0_i32 = arith.constant 0 : i32
    %c0_i32_0 = arith.constant 0 : i32
    return %arg0, %c0_i32 : i32, i32
  }
}

module attributes {stable_mosaic.version = 11 : i64} {
  func.func @_fused_matmul_kernel(%arg0: i32, %arg1: memref<10x32xf32, #tpu.memory_space<vmem>>, %arg2: memref<1x32xf32, #tpu.memory_space<vmem>>, %arg3: memref<1x32xf32, #tpu.memory_space<vmem>>, %arg4: memref<32x96xbf16, #tpu.memory_space<vmem>>, %arg5: memref<1x96xf32, #tpu.memory_space<vmem>>, %arg6: memref<10x96xbf16, #tpu.memory_space<vmem>>) attributes {dimension_semantics = [#tpu.dimension_semantics<parallel>], iteration_bounds = array<i64: 1>, scalar_prefetch = 0 : i64, scratch_operands = 0 : i64, tpu.core_type = #tpu.core_type<tc>, window_params = [{transform_indices = @transform_0, window_bounds = array<i64: 10, 32>}, {pipeline_mode = #tpu.pipeline_mode<synchronous>, transform_indices = @transform_1, window_bounds = array<i64: 1, 32>}, {pipeline_mode = #tpu.pipeline_mode<synchronous>, transform_indices = @transform_2, window_bounds = array<i64: 1, 32>}, {pipeline_mode = #tpu.pipeline_mode<synchronous>, transform_indices = @transform_3, window_bounds = array<i64: 32, 96>}, {pipeline_mode = #tpu.pipeline_mode<synchronous>, transform_indices = @transform_4, window_bounds = array<i64: 1, 96>}, {transform_indices = @transform_5, window_bounds = array<i64: 10, 96>}]} {
    %c0 = arith.constant 0 : index
    %c0_0 = arith.constant 0 : index
    %0 = vector.load %arg1[%c0, %c0_0] : memref<10x32xf32, #tpu.memory_space<vmem>>, vector<10x32xf32>
    %cst = arith.constant dense<0.000000e+00> : vector<10xf32>
    %1 = vector.multi_reduction <add>, %0, %cst [1] : vector<10x32xf32> to vector<10xf32>
    %2 = vector.shape_cast %1 : vector<10xf32> to vector<10x1xf32>
    %cst_1 = arith.constant 3.200000e+01 : f32
    %3 = vector.broadcast %cst_1 : f32 to vector<10x1xf32>
    %4 = arith.divf %2, %3 : vector<10x1xf32>
    %5 = vector.broadcast %4 : vector<10x1xf32> to vector<10x32xf32>
    %6 = arith.subf %0, %5 : vector<10x32xf32>
    %7 = arith.mulf %6, %6 : vector<10x32xf32>
    %cst_2 = arith.constant dense<0.000000e+00> : vector<10xf32>
    %8 = vector.multi_reduction <add>, %7, %cst_2 [1] : vector<10x32xf32> to vector<10xf32>
    %9 = vector.shape_cast %8 : vector<10xf32> to vector<10x1xf32>
    %cst_3 = arith.constant 3.200000e+01 : f32
    %10 = vector.broadcast %cst_3 : f32 to vector<10x1xf32>
    %11 = arith.divf %9, %10 : vector<10x1xf32>
    %cst_4 = arith.constant 9.99999997E-7 : f32
    %12 = vector.broadcast %cst_4 : f32 to vector<10x1xf32>
    %13 = arith.addf %11, %12 : vector<10x1xf32>
    %14 = math.rsqrt %13 : vector<10x1xf32>
    %15 = vector.broadcast %14 : vector<10x1xf32> to vector<10x32xf32>
    %16 = arith.mulf %6, %15 : vector<10x32xf32>
    %c0_5 = arith.constant 0 : index
    %c0_6 = arith.constant 0 : index
    %17 = vector.load %arg2[%c0_5, %c0_6] : memref<1x32xf32, #tpu.memory_space<vmem>>, vector<1x32xf32>
    %18 = vector.broadcast %17 : vector<1x32xf32> to vector<10x32xf32>
    %19 = arith.mulf %16, %18 : vector<10x32xf32>
    %c0_7 = arith.constant 0 : index
    %c0_8 = arith.constant 0 : index
    %20 = vector.load %arg3[%c0_7, %c0_8] : memref<1x32xf32, #tpu.memory_space<vmem>>, vector<1x32xf32>
    %21 = vector.broadcast %20 : vector<1x32xf32> to vector<10x32xf32>
    %22 = arith.addf %19, %21 : vector<10x32xf32>
    %23 = arith.truncf %22 : vector<10x32xf32> to vector<10x32xbf16>
    %c0_9 = arith.constant 0 : index
    %c0_10 = arith.constant 0 : index
    %24 = vector.load %arg4[%c0_9, %c0_10] : memref<32x96xbf16, #tpu.memory_space<vmem>>, vector<32x96xbf16>
    %cst_11 = arith.constant dense<0.000000e+00> : vector<10x96xf32>
    %25 = tpu.matmul %23, %24, %cst_11 {dimension_numbers = #tpu.dot_dimension_numbers<[1], [0], [0], [1], [0, 0, 1, 1], [], []>} : vector<10x32xbf16>, vector<32x96xbf16>, vector<10x96xf32> -> vector<10x96xf32>
    %c0_12 = arith.constant 0 : index
    %c0_13 = arith.constant 0 : index
    %26 = vector.load %arg5[%c0_12, %c0_13] : memref<1x96xf32, #tpu.memory_space<vmem>>, vector<1x96xf32>
    %27 = vector.broadcast %26 : vector<1x96xf32> to vector<10x96xf32>
    %28 = arith.addf %25, %27 : vector<10x96xf32>
    %29 = arith.truncf %28 : vector<10x96xf32> to vector<10x96xbf16>
    %c0_14 = arith.constant 0 : index
    %c0_15 = arith.constant 0 : index
    %30 = vector.load %arg6[%c0_14, %c0_15] : memref<10x96xbf16, #tpu.memory_space<vmem>>, vector<10x96xbf16>
    tpu.vector_store %arg6[%c0_14, %c0_15], %29 {strides = array<i32>} : memref<10x96xbf16, #tpu.memory_space<vmem>>, vector<10x96xbf16>,
    return
  }
  func.func @transform_0(%arg0: i32) -> (i32, i32) {
    %c0_i32 = arith.constant 0 : i32
    %c0_i32_0 = arith.constant 0 : i32
    return %arg0, %c0_i32 : i32, i32
  }
  func.func @transform_1(%arg0: i32) -> (i32, i32) {
    %c0_i32 = arith.constant 0 : i32
    %c0_i32_0 = arith.constant 0 : i32
    %c0_i32_1 = arith.constant 0 : i32
    return %c0_i32, %c0_i32_0 : i32, i32
  }
  func.func @transform_2(%arg0: i32) -> (i32, i32) {
    %c0_i32 = arith.constant 0 : i32
    %c0_i32_0 = arith.constant 0 : i32
    %c0_i32_1 = arith.constant 0 : i32
    return %c0_i32, %c0_i32_0 : i32, i32
  }
  func.func @transform_3(%arg0: i32) -> (i32, i32) {
    %c0_i32 = arith.constant 0 : i32
    %c0_i32_0 = arith.constant 0 : i32
    %c0_i32_1 = arith.constant 0 : i32
    return %c0_i32, %c0_i32_0 : i32, i32
  }
  func.func @transform_4(%arg0: i32) -> (i32, i32) {
    %c0_i32 = arith.constant 0 : i32
    %c0_i32_0 = arith.constant 0 : i32
    %c0_i32_1 = arith.constant 0 : i32
    return %c0_i32, %c0_i32_0 : i32, i32
  }
  func.func @transform_5(%arg0: i32) -> (i32, i32) {
    %c0_i32 = arith.constant 0 : i32
    %c0_i32_0 = arith.constant 0 : i32
    return %arg0, %c0_i32 : i32, i32
  }
}

module attributes {stable_mosaic.version = 11 : i64} {
  func.func @_attention_proj_kernel(%arg0: i32, %arg1: memref<1x4x5x8xbf16, #tpu.memory_space<vmem>>, %arg2: memref<1x4x5x8xbf16, #tpu.memory_space<vmem>>, %arg3: memref<1x4x5x8xbf16, #tpu.memory_space<vmem>>, %arg4: memref<4x8x32xbf16, #tpu.memory_space<vmem>>, %arg5: memref<1x32xf32, #tpu.memory_space<vmem>>, %arg6: memref<1x5x32xf32, #tpu.memory_space<vmem>>, %arg7: memref<1x5x32xf32, #tpu.memory_space<vmem>>) attributes {dimension_semantics = [#tpu.dimension_semantics<parallel>], iteration_bounds = array<i64: 2>, scalar_prefetch = 0 : i64, scratch_operands = 0 : i64, tpu.core_type = #tpu.core_type<tc>, window_params = [{transform_indices = @transform_0, window_bounds = array<i64: 1, 4, 5, 8>}, {transform_indices = @transform_1, window_bounds = array<i64: 1, 4, 5, 8>}, {transform_indices = @transform_2, window_bounds = array<i64: 1, 4, 5, 8>}, {pipeline_mode = #tpu.pipeline_mode<synchronous>, transform_indices = @transform_3, window_bounds = array<i64: 4, 8, 32>}, {pipeline_mode = #tpu.pipeline_mode<synchronous>, transform_indices = @transform_4, window_bounds = array<i64: 1, 32>}, {transform_indices = @transform_5, window_bounds = array<i64: 1, 5, 32>}, {transform_indices = @transform_6, window_bounds = array<i64: 1, 5, 32>}]} {
    %c0 = arith.constant 0 : index
    %c0_0 = arith.constant 0 : index
    %c0_1 = arith.constant 0 : index
    %c0_2 = arith.constant 0 : index
    %0 = vector.load %arg1[%c0, %c0_0, %c0_1, %c0_2] : memref<1x4x5x8xbf16, #tpu.memory_space<vmem>>, vector<1x4x5x8xbf16>
    %1 = vector.shape_cast %0 : vector<1x4x5x8xbf16> to vector<4x5x8xbf16>
    %c0_3 = arith.constant 0 : index
    %c0_4 = arith.constant 0 : index
    %c0_5 = arith.constant 0 : index
    %c0_6 = arith.constant 0 : index
    %2 = vector.load %arg2[%c0_3, %c0_4, %c0_5, %c0_6] : memref<1x4x5x8xbf16, #tpu.memory_space<vmem>>, vector<1x4x5x8xbf16>
    %3 = vector.shape_cast %2 : vector<1x4x5x8xbf16> to vector<4x5x8xbf16>
    %c0_7 = arith.constant 0 : index
    %c0_8 = arith.constant 0 : index
    %c0_9 = arith.constant 0 : index
    %c0_10 = arith.constant 0 : index
    %4 = vector.load %arg3[%c0_7, %c0_8, %c0_9, %c0_10] : memref<1x4x5x8xbf16, #tpu.memory_space<vmem>>, vector<1x4x5x8xbf16>
    %5 = vector.shape_cast %4 : vector<1x4x5x8xbf16> to vector<4x5x8xbf16>
    %cst = arith.constant dense<0.000000e+00> : vector<4x5x5xf32>
    %6 = tpu.matmul %1, %3, %cst {dimension_numbers = #tpu.dot_dimension_numbers<[2], [2], [1], [1], [0, 0, 0, 1, 1, 1], [0], [0]>} : vector<4x5x8xbf16>, vector<4x5x8xbf16>, vector<4x5x5xf32> -> vector<4x5x5xf32>
    %cst_11 = arith.constant dense<0xFF800000> : vector<4x5xf32>
    %7 = vector.multi_reduction <maximumf>, %6, %cst_11 [2] : vector<4x5x5xf32> to vector<4x5xf32>
    %8 = vector.shape_cast %7 : vector<4x5xf32> to vector<4x5x1xf32>
    %9 = vector.broadcast %8 : vector<4x5x1xf32> to vector<4x5x5xf32>
    %10 = arith.subf %6, %9 : vector<4x5x5xf32>
    %11 = math.exp %10 : vector<4x5x5xf32>
    %cst_12 = arith.constant dense<0.000000e+00> : vector<4x5xf32>
    %12 = vector.multi_reduction <add>, %11, %cst_12 [2] : vector<4x5x5xf32> to vector<4x5xf32>
    %13 = vector.shape_cast %12 : vector<4x5xf32> to vector<4x5x1xf32>
    %14 = tpu.reciprocal %13 {approx = true} : vector<4x5x1xf32> -> vector<4x5x1xf32>
    %15 = vector.broadcast %14 : vector<4x5x1xf32> to vector<4x5x5xf32>
    %16 = arith.mulf %11, %15 : vector<4x5x5xf32>
    %17 = arith.truncf %16 : vector<4x5x5xf32> to vector<4x5x5xbf16>
    %cst_13 = arith.constant dense<0.000000e+00> : vector<4x5x8xf32>
    %18 = tpu.matmul %17, %5, %cst_13 {dimension_numbers = #tpu.dot_dimension_numbers<[2], [1], [1], [2], [0, 0, 0, 1, 1, 2], [0], [0]>} : vector<4x5x5xbf16>, vector<4x5x8xbf16>, vector<4x5x8xf32> -> vector<4x5x8xf32>
    %19 = arith.truncf %18 : vector<4x5x8xf32> to vector<4x5x8xbf16>
    %c0_14 = arith.constant 0 : index
    %c0_15 = arith.constant 0 : index
    %c0_16 = arith.constant 0 : index
    %20 = vector.load %arg6[%c0_14, %c0_15, %c0_16] : memref<1x5x32xf32, #tpu.memory_space<vmem>>, vector<1x5x32xf32>
    %21 = vector.shape_cast %20 : vector<1x5x32xf32> to vector<5x32xf32>
    %c0_17 = arith.constant 0 : index
    %c0_18 = arith.constant 0 : index
    %22 = vector.load %arg5[%c0_17, %c0_18] : memref<1x32xf32, #tpu.memory_space<vmem>>, vector<1x32xf32>
    %23 = vector.broadcast %22 : vector<1x32xf32> to vector<5x32xf32>
    %24 = arith.addf %21, %23 : vector<5x32xf32>
    %25 = vector.extract_strided_slice %19 {offsets = [0, 0, 0], sizes = [1, 5, 8], strides = [1, 1, 1]} : vector<4x5x8xbf16> to vector<1x5x8xbf16>
    %26 = vector.shape_cast %25 : vector<1x5x8xbf16> to vector<5x8xbf16>
    %c0_19 = arith.constant 0 : index
    %c0_20 = arith.constant 0 : index
    %c0_21 = arith.constant 0 : index
    %27 = vector.load %arg4[%c0_19, %c0_20, %c0_21] : memref<4x8x32xbf16, #tpu.memory_space<vmem>>, vector<1x8x32xbf16>
    %28 = vector.shape_cast %27 : vector<1x8x32xbf16> to vector<8x32xbf16>
    %cst_22 = arith.constant dense<0.000000e+00> : vector<5x32xf32>
    %29 = tpu.matmul %26, %28, %cst_22 {dimension_numbers = #tpu.dot_dimension_numbers<[1], [0], [0], [1], [0, 0, 1, 1], [], []>} : vector<5x8xbf16>, vector<8x32xbf16>, vector<5x32xf32> -> vector<5x32xf32>
    %30 = arith.addf %24, %29 : vector<5x32xf32>
    %31 = vector.extract_strided_slice %19 {offsets = [1, 0, 0], sizes = [1, 5, 8], strides = [1, 1, 1]} : vector<4x5x8xbf16> to vector<1x5x8xbf16>
    %32 = vector.shape_cast %31 : vector<1x5x8xbf16> to vector<5x8xbf16>
    %c1 = arith.constant 1 : index
    %c0_23 = arith.constant 0 : index
    %c0_24 = arith.constant 0 : index
    %33 = vector.load %arg4[%c1, %c0_23, %c0_24] : memref<4x8x32xbf16, #tpu.memory_space<vmem>>, vector<1x8x32xbf16>
    %34 = vector.shape_cast %33 : vector<1x8x32xbf16> to vector<8x32xbf16>
    %cst_25 = arith.constant dense<0.000000e+00> : vector<5x32xf32>
    %35 = tpu.matmul %32, %34, %cst_25 {dimension_numbers = #tpu.dot_dimension_numbers<[1], [0], [0], [1], [0, 0, 1, 1], [], []>} : vector<5x8xbf16>, vector<8x32xbf16>, vector<5x32xf32> -> vector<5x32xf32>
    %36 = arith.addf %30, %35 : vector<5x32xf32>
    %37 = vector.extract_strided_slice %19 {offsets = [2, 0, 0], sizes = [1, 5, 8], strides = [1, 1, 1]} : vector<4x5x8xbf16> to vector<1x5x8xbf16>
    %38 = vector.shape_cast %37 : vector<1x5x8xbf16> to vector<5x8xbf16>
    %c2 = arith.constant 2 : index
    %c0_26 = arith.constant 0 : index
    %c0_27 = arith.constant 0 : index
    %39 = vector.load %arg4[%c2, %c0_26, %c0_27] : memref<4x8x32xbf16, #tpu.memory_space<vmem>>, vector<1x8x32xbf16>
    %40 = vector.shape_cast %39 : vector<1x8x32xbf16> to vector<8x32xbf16>
    %cst_28 = arith.constant dense<0.000000e+00> : vector<5x32xf32>
    %41 = tpu.matmul %38, %40, %cst_28 {dimension_numbers = #tpu.dot_dimension_numbers<[1], [0], [0], [1], [0, 0, 1, 1], [], []>} : vector<5x8xbf16>, vector<8x32xbf16>, vector<5x32xf32> -> vector<5x32xf32>
    %42 = arith.addf %36, %41 : vector<5x32xf32>
    %43 = vector.extract_strided_slice %19 {offsets = [3, 0, 0], sizes = [1, 5, 8], strides = [1, 1, 1]} : vector<4x5x8xbf16> to vector<1x5x8xbf16>
    %44 = vector.shape_cast %43 : vector<1x5x8xbf16> to vector<5x8xbf16>
    %c3 = arith.constant 3 : index
    %c0_29 = arith.constant 0 : index
    %c0_30 = arith.constant 0 : index
    %45 = vector.load %arg4[%c3, %c0_29, %c0_30] : memref<4x8x32xbf16, #tpu.memory_space<vmem>>, vector<1x8x32xbf16>
    %46 = vector.shape_cast %45 : vector<1x8x32xbf16> to vector<8x32xbf16>
    %cst_31 = arith.constant dense<0.000000e+00> : vector<5x32xf32>
    %47 = tpu.matmul %44, %46, %cst_31 {dimension_numbers = #tpu.dot_dimension_numbers<[1], [0], [0], [1], [0, 0, 1, 1], [], []>} : vector<5x8xbf16>, vector<8x32xbf16>, vector<5x32xf32> -> vector<5x32xf32>
    %48 = arith.addf %42, %47 : vector<5x32xf32>
    %c0_32 = arith.constant 0 : index
    %c0_33 = arith.constant 0 : index
    %c0_34 = arith.constant 0 : index
    %49 = vector.load %arg7[%c0_32, %c0_33, %c0_34] : memref<1x5x32xf32, #tpu.memory_space<vmem>>, vector<1x5x32xf32>
    %50 = vector.shape_cast %49 : vector<1x5x32xf32> to vector<5x32xf32>
    %51 = vector.shape_cast %48 : vector<5x32xf32> to vector<1x5x32xf32>
    tpu.vector_store %arg7[%c0_32, %c0_33, %c0_34], %51 {strides = array<i32>} : memref<1x5x32xf32, #tpu.memory_space<vmem>>, vector<1x5x32xf32>,
    return
  }
  func.func @transform_0(%arg0: i32) -> (i32, i32, i32, i32) {
    %c0_i32 = arith.constant 0 : i32
    %c0_i32_0 = arith.constant 0 : i32
    %c0_i32_1 = arith.constant 0 : i32
    %c0_i32_2 = arith.constant 0 : i32
    return %arg0, %c0_i32, %c0_i32_0, %c0_i32_1 : i32, i32, i32, i32
  }
  func.func @transform_1(%arg0: i32) -> (i32, i32, i32, i32) {
    %c0_i32 = arith.constant 0 : i32
    %c0_i32_0 = arith.constant 0 : i32
    %c0_i32_1 = arith.constant 0 : i32
    %c0_i32_2 = arith.constant 0 : i32
    return %arg0, %c0_i32, %c0_i32_0, %c0_i32_1 : i32, i32, i32, i32
  }
  func.func @transform_2(%arg0: i32) -> (i32, i32, i32, i32) {
    %c0_i32 = arith.constant 0 : i32
    %c0_i32_0 = arith.constant 0 : i32
    %c0_i32_1 = arith.constant 0 : i32
    %c0_i32_2 = arith.constant 0 : i32
    return %arg0, %c0_i32, %c0_i32_0, %c0_i32_1 : i32, i32, i32, i32
  }
  func.func @transform_3(%arg0: i32) -> (i32, i32, i32) {
    %c0_i32 = arith.constant 0 : i32
    %c0_i32_0 = arith.constant 0 : i32
    %c0_i32_1 = arith.constant 0 : i32
    %c0_i32_2 = arith.constant 0 : i32
    return %c0_i32, %c0_i32_0, %c0_i32_1 : i32, i32, i32
  }
  func.func @transform_4(%arg0: i32) -> (i32, i32) {
    %c0_i32 = arith.constant 0 : i32
    %c0_i32_0 = arith.constant 0 : i32
    %c0_i32_1 = arith.constant 0 : i32
    return %c0_i32, %c0_i32_0 : i32, i32
  }
  func.func @transform_5(%arg0: i32) -> (i32, i32, i32) {
    %c0_i32 = arith.constant 0 : i32
    %c0_i32_0 = arith.constant 0 : i32
    %c0_i32_1 = arith.constant 0 : i32
    return %arg0, %c0_i32, %c0_i32_0 : i32, i32, i32
  }
  func.func @transform_6(%arg0: i32) -> (i32, i32, i32) {
    %c0_i32 = arith.constant 0 : i32
    %c0_i32_0 = arith.constant 0 : i32
    %c0_i32_1 = arith.constant 0 : i32
    return %arg0, %c0_i32, %c0_i32_0 : i32, i32, i32
  }
}

module attributes {stable_mosaic.version = 11 : i64} {
  func.func @_fused_matmul_kernel(%arg0: i32, %arg1: memref<10x32xf32, #tpu.memory_space<vmem>>, %arg2: memref<1x32xf32, #tpu.memory_space<vmem>>, %arg3: memref<1x32xf32, #tpu.memory_space<vmem>>, %arg4: memref<32x128xbf16, #tpu.memory_space<vmem>>, %arg5: memref<1x128xf32, #tpu.memory_space<vmem>>, %arg6: memref<10x128xbf16, #tpu.memory_space<vmem>>) attributes {dimension_semantics = [#tpu.dimension_semantics<parallel>], iteration_bounds = array<i64: 1>, scalar_prefetch = 0 : i64, scratch_operands = 0 : i64, tpu.core_type = #tpu.core_type<tc>, window_params = [{transform_indices = @transform_0, window_bounds = array<i64: 10, 32>}, {pipeline_mode = #tpu.pipeline_mode<synchronous>, transform_indices = @transform_1, window_bounds = array<i64: 1, 32>}, {pipeline_mode = #tpu.pipeline_mode<synchronous>, transform_indices = @transform_2, window_bounds = array<i64: 1, 32>}, {pipeline_mode = #tpu.pipeline_mode<synchronous>, transform_indices = @transform_3, window_bounds = array<i64: 32, 128>}, {pipeline_mode = #tpu.pipeline_mode<synchronous>, transform_indices = @transform_4, window_bounds = array<i64: 1, 128>}, {transform_indices = @transform_5, window_bounds = array<i64: 10, 128>}]} {
    %c0 = arith.constant 0 : index
    %c0_0 = arith.constant 0 : index
    %0 = vector.load %arg1[%c0, %c0_0] : memref<10x32xf32, #tpu.memory_space<vmem>>, vector<10x32xf32>
    %cst = arith.constant dense<0.000000e+00> : vector<10xf32>
    %1 = vector.multi_reduction <add>, %0, %cst [1] : vector<10x32xf32> to vector<10xf32>
    %2 = vector.shape_cast %1 : vector<10xf32> to vector<10x1xf32>
    %cst_1 = arith.constant 3.200000e+01 : f32
    %3 = vector.broadcast %cst_1 : f32 to vector<10x1xf32>
    %4 = arith.divf %2, %3 : vector<10x1xf32>
    %5 = vector.broadcast %4 : vector<10x1xf32> to vector<10x32xf32>
    %6 = arith.subf %0, %5 : vector<10x32xf32>
    %7 = arith.mulf %6, %6 : vector<10x32xf32>
    %cst_2 = arith.constant dense<0.000000e+00> : vector<10xf32>
    %8 = vector.multi_reduction <add>, %7, %cst_2 [1] : vector<10x32xf32> to vector<10xf32>
    %9 = vector.shape_cast %8 : vector<10xf32> to vector<10x1xf32>
    %cst_3 = arith.constant 3.200000e+01 : f32
    %10 = vector.broadcast %cst_3 : f32 to vector<10x1xf32>
    %11 = arith.divf %9, %10 : vector<10x1xf32>
    %cst_4 = arith.constant 9.99999997E-7 : f32
    %12 = vector.broadcast %cst_4 : f32 to vector<10x1xf32>
    %13 = arith.addf %11, %12 : vector<10x1xf32>
    %14 = math.rsqrt %13 : vector<10x1xf32>
    %15 = vector.broadcast %14 : vector<10x1xf32> to vector<10x32xf32>
    %16 = arith.mulf %6, %15 : vector<10x32xf32>
    %c0_5 = arith.constant 0 : index
    %c0_6 = arith.constant 0 : index
    %17 = vector.load %arg2[%c0_5, %c0_6] : memref<1x32xf32, #tpu.memory_space<vmem>>, vector<1x32xf32>
    %18 = vector.broadcast %17 : vector<1x32xf32> to vector<10x32xf32>
    %19 = arith.mulf %16, %18 : vector<10x32xf32>
    %c0_7 = arith.constant 0 : index
    %c0_8 = arith.constant 0 : index
    %20 = vector.load %arg3[%c0_7, %c0_8] : memref<1x32xf32, #tpu.memory_space<vmem>>, vector<1x32xf32>
    %21 = vector.broadcast %20 : vector<1x32xf32> to vector<10x32xf32>
    %22 = arith.addf %19, %21 : vector<10x32xf32>
    %23 = arith.truncf %22 : vector<10x32xf32> to vector<10x32xbf16>
    %c0_9 = arith.constant 0 : index
    %c0_10 = arith.constant 0 : index
    %24 = vector.load %arg4[%c0_9, %c0_10] : memref<32x128xbf16, #tpu.memory_space<vmem>>, vector<32x128xbf16>
    %cst_11 = arith.constant dense<0.000000e+00> : vector<10x128xf32>
    %25 = tpu.matmul %23, %24, %cst_11 {dimension_numbers = #tpu.dot_dimension_numbers<[1], [0], [0], [1], [0, 0, 1, 1], [], []>} : vector<10x32xbf16>, vector<32x128xbf16>, vector<10x128xf32> -> vector<10x128xf32>
    %c0_12 = arith.constant 0 : index
    %c0_13 = arith.constant 0 : index
    %26 = vector.load %arg5[%c0_12, %c0_13] : memref<1x128xf32, #tpu.memory_space<vmem>>, vector<1x128xf32>
    %27 = vector.broadcast %26 : vector<1x128xf32> to vector<10x128xf32>
    %28 = arith.addf %25, %27 : vector<10x128xf32>
    %cst_14 = arith.constant 5.000000e-01 : f32
    %29 = vector.broadcast %cst_14 : f32 to vector<10x128xf32>
    %30 = arith.mulf %29, %28 : vector<10x128xf32>
    %cst_15 = arith.constant 4.471500e-02 : f32
    %31 = vector.broadcast %cst_15 : f32 to vector<10x128xf32>
    %32 = arith.mulf %31, %28 : vector<10x128xf32>
    %33 = arith.mulf %32, %28 : vector<10x128xf32>
    %34 = arith.mulf %33, %28 : vector<10x128xf32>
    %35 = arith.addf %28, %34 : vector<10x128xf32>
    %cst_16 = arith.constant 0.797884583 : f32
    %36 = vector.broadcast %cst_16 : f32 to vector<10x128xf32>
    %37 = arith.mulf %36, %35 : vector<10x128xf32>
    %38 = math.tanh %37 : vector<10x128xf32>
    %cst_17 = arith.constant 1.000000e+00 : f32
    %39 = vector.broadcast %cst_17 : f32 to vector<10x128xf32>
    %40 = arith.addf %39, %38 : vector<10x128xf32>
    %41 = arith.mulf %30, %40 : vector<10x128xf32>
    %42 = arith.truncf %41 : vector<10x128xf32> to vector<10x128xbf16>
    %c0_18 = arith.constant 0 : index
    %c0_19 = arith.constant 0 : index
    %43 = vector.load %arg6[%c0_18, %c0_19] : memref<10x128xbf16, #tpu.memory_space<vmem>>, vector<10x128xbf16>
    tpu.vector_store %arg6[%c0_18, %c0_19], %42 {strides = array<i32>} : memref<10x128xbf16, #tpu.memory_space<vmem>>, vector<10x128xbf16>,
    return
  }
  func.func @transform_0(%arg0: i32) -> (i32, i32) {
    %c0_i32 = arith.constant 0 : i32
    %c0_i32_0 = arith.constant 0 : i32
    return %arg0, %c0_i32 : i32, i32
  }
  func.func @transform_1(%arg0: i32) -> (i32, i32) {
    %c0_i32 = arith.constant 0 : i32
    %c0_i32_0 = arith.constant 0 : i32
    %c0_i32_1 = arith.constant 0 : i32
    return %c0_i32, %c0_i32_0 : i32, i32
  }
  func.func @transform_2(%arg0: i32) -> (i32, i32) {
    %c0_i32 = arith.constant 0 : i32
    %c0_i32_0 = arith.constant 0 : i32
    %c0_i32_1 = arith.constant 0 : i32
    return %c0_i32, %c0_i32_0 : i32, i32
  }
  func.func @transform_3(%arg0: i32) -> (i32, i32) {
    %c0_i32 = arith.constant 0 : i32
    %c0_i32_0 = arith.constant 0 : i32
    %c0_i32_1 = arith.constant 0 : i32
    return %c0_i32, %c0_i32_0 : i32, i32
  }
  func.func @transform_4(%arg0: i32) -> (i32, i32) {
    %c0_i32 = arith.constant 0 : i32
    %c0_i32_0 = arith.constant 0 : i32
    %c0_i32_1 = arith.constant 0 : i32
    return %c0_i32, %c0_i32_0 : i32, i32
  }
  func.func @transform_5(%arg0: i32) -> (i32, i32) {
    %c0_i32 = arith.constant 0 : i32
    %c0_i32_0 = arith.constant 0 : i32
    return %arg0, %c0_i32 : i32, i32
  }
}

module attributes {stable_mosaic.version = 11 : i64} {
  func.func @_fused_matmul_kernel(%arg0: i32, %arg1: memref<10x128xbf16, #tpu.memory_space<vmem>>, %arg2: memref<128x32xbf16, #tpu.memory_space<vmem>>, %arg3: memref<1x32xf32, #tpu.memory_space<vmem>>, %arg4: memref<10x32xf32, #tpu.memory_space<vmem>>, %arg5: memref<10x32xf32, #tpu.memory_space<vmem>>) attributes {dimension_semantics = [#tpu.dimension_semantics<parallel>], iteration_bounds = array<i64: 1>, scalar_prefetch = 0 : i64, scratch_operands = 0 : i64, tpu.core_type = #tpu.core_type<tc>, window_params = [{transform_indices = @transform_0, window_bounds = array<i64: 10, 128>}, {pipeline_mode = #tpu.pipeline_mode<synchronous>, transform_indices = @transform_1, window_bounds = array<i64: 128, 32>}, {pipeline_mode = #tpu.pipeline_mode<synchronous>, transform_indices = @transform_2, window_bounds = array<i64: 1, 32>}, {transform_indices = @transform_3, window_bounds = array<i64: 10, 32>}, {transform_indices = @transform_4, window_bounds = array<i64: 10, 32>}]} {
    %c0 = arith.constant 0 : index
    %c0_0 = arith.constant 0 : index
    %0 = vector.load %arg1[%c0, %c0_0] : memref<10x128xbf16, #tpu.memory_space<vmem>>, vector<10x128xbf16>
    %c0_1 = arith.constant 0 : index
    %c0_2 = arith.constant 0 : index
    %1 = vector.load %arg2[%c0_1, %c0_2] : memref<128x32xbf16, #tpu.memory_space<vmem>>, vector<128x32xbf16>
    %cst = arith.constant dense<0.000000e+00> : vector<10x32xf32>
    %2 = tpu.matmul %0, %1, %cst {dimension_numbers = #tpu.dot_dimension_numbers<[1], [0], [0], [1], [0, 0, 1, 1], [], []>} : vector<10x128xbf16>, vector<128x32xbf16>, vector<10x32xf32> -> vector<10x32xf32>
    %c0_3 = arith.constant 0 : index
    %c0_4 = arith.constant 0 : index
    %3 = vector.load %arg3[%c0_3, %c0_4] : memref<1x32xf32, #tpu.memory_space<vmem>>, vector<1x32xf32>
    %4 = vector.broadcast %3 : vector<1x32xf32> to vector<10x32xf32>
    %5 = arith.addf %2, %4 : vector<10x32xf32>
    %c0_5 = arith.constant 0 : index
    %c0_6 = arith.constant 0 : index
    %6 = vector.load %arg4[%c0_5, %c0_6] : memref<10x32xf32, #tpu.memory_space<vmem>>, vector<10x32xf32>
    %7 = arith.addf %5, %6 : vector<10x32xf32>
    %c0_7 = arith.constant 0 : index
    %c0_8 = arith.constant 0 : index
    %8 = vector.load %arg5[%c0_7, %c0_8] : memref<10x32xf32, #tpu.memory_space<vmem>>, vector<10x32xf32>
    tpu.vector_store %arg5[%c0_7, %c0_8], %7 {strides = array<i32>} : memref<10x32xf32, #tpu.memory_space<vmem>>, vector<10x32xf32>,
    return
  }
  func.func @transform_0(%arg0: i32) -> (i32, i32) {
    %c0_i32 = arith.constant 0 : i32
    %c0_i32_0 = arith.constant 0 : i32
    return %arg0, %c0_i32 : i32, i32
  }
  func.func @transform_1(%arg0: i32) -> (i32, i32) {
    %c0_i32 = arith.constant 0 : i32
    %c0_i32_0 = arith.constant 0 : i32
    %c0_i32_1 = arith.constant 0 : i32
    return %c0_i32, %c0_i32_0 : i32, i32
  }
  func.func @transform_2(%arg0: i32) -> (i32, i32) {
    %c0_i32 = arith.constant 0 : i32
    %c0_i32_0 = arith.constant 0 : i32
    %c0_i32_1 = arith.constant 0 : i32
    return %c0_i32, %c0_i32_0 : i32, i32
  }
  func.func @transform_3(%arg0: i32) -> (i32, i32) {
    %c0_i32 = arith.constant 0 : i32
    %c0_i32_0 = arith.constant 0 : i32
    return %arg0, %c0_i32 : i32, i32
  }
  func.func @transform_4(%arg0: i32) -> (i32, i32) {
    %c0_i32 = arith.constant 0 : i32
    %c0_i32_0 = arith.constant 0 : i32
    return %arg0, %c0_i32 : i32, i32
  }
}

</mosaic_0001>

<bundles_post_ra>
// kernel: timm_model_forward.10
= control target key start
LH: loop header
LB: loop body
LE: loop exit
PB: predicated region body
PF: predicated region fallthrough
CT: control target
= control target key end

     0   :  { %vm23_vm0 = vcmask 261120   ;;  %vm27_vm1 = vcmask 254976   ;;  %v183_v15 = vmov 0.0   ;;  %vm184_vm2 = vmmov 0   ;;  %s245_s0 = inlined_call_operand.vmem [shape: f32[10,32], index: 0, kind: input, shape index: {}]   ;;  %s246_s3 = inlined_call_operand.vmem [shape: bf16[32,96], index: 3, kind: input, shape index: {}]   ;;  %s247_s1 = inlined_call_operand.vmem [shape: f32[1,32], index: 1, kind: input, shape index: {}]   ;;  %s248_s2 = inlined_call_operand.vmem [shape: f32[1,32], index: 2, kind: input, shape index: {}]   ;;  %s249_s4 = inlined_call_operand.vmem [shape: f32[1,96], index: 4, kind: input, shape index: {}]   ;;  %s250_s5 = inlined_call_operand.vmem [shape: bf16[10,96], index: 5, kind: output, shape index: {}]  }
   0x1   :  { %v21_v0 = vld [vmem:[%s245_s0] sm:$0xff]  ;;  %v22_v1 = vld [vmem:[%s245_s0 + $0x8] sm:$0x3]  ;;  %167 = vmatprep.subr.bf16.mxu0 %v183_v15  ;;  %171 = vmatprep.mubr.msk.bf16.mxu0 %vm184_vm2, %v183_v15  ;;  %vm146_vm3 = vcmask 781312   ;;  %vm148_vm4 = vcmask 778240  }
   0x2   :  { %v24_v2 = vsel %vm23_vm0, %v21_v0, 0.0  ;;  %v28_v3 = vsel %vm27_vm1, %v22_v1, 0.0  ;;  %v177_v14 = vld [vmem:[%s246_s3] sm:$0xff]   ;;  %v178_v16 = vld [vmem:[%s246_s3 + $0x8] sm:$0xff]  }
   0x3   :  { %25 = vadd.xlane.f32.xlu0 %v24_v2  ;;  %168 = vmatpush3.bf16.msra.mxu0 %v177_v14  ;;  %v154_v25 = vld [vmem:[%s247_s1] ss:$0 sm:$0xff] }
   0x4   :  { %169 = vmatprep.subr.bf16.mxu0 %v183_v15  ;;  %v155_v29 = vld [vmem:[%s248_s2] ss:$0 sm:$0xff] }
   0x5   :  { %v156_v34 = vld [vmem:[%s249_s4] ss:$0 sm:$0xff] }
   0x7   :  { %29 = vadd.xlane.f32.xlu0 %v28_v3  ;;  %170 = vmatpush3.bf16.msra.mxu0 %v178_v16 }
  0x90   :  { %v26_v4 = vpop.xlane.xlu0 %25 }
  0x91   :  { %v32_v5 = vmul.f32 0.03125, %v26_v4 }
  0x93   :  { %v34_v6 = vsub.f32 %v21_v0, %v32_v5 }
  0x94   :  { %v30_v7 = vpop.xlane.xlu0 %29 }
  0x95   :  { %v33_v8 = vmul.f32 0.03125, %v30_v7  ;;  %v36_v9 = vmul.f32 %v34_v6, %v34_v6 }
  0x97   :  { %v35_v10 = vsub.f32 %v22_v1, %v33_v8  ;;  %v38_v11 = vsel %vm23_vm0, %v36_v9, 0.0 }
  0x98   :  { %39 = vadd.xlane.f32.xlu1 %v38_v11 }
  0x99   :  { %v37_v12 = vmul.f32 %v35_v10, %v35_v10 }
  0x9b   :  { %v41_v13 = vsel %vm27_vm1, %v37_v12, 0.0 }
  0x9c   :  { %42 = vadd.xlane.f32.xlu1 %v41_v13 }
 0x125   :  { %v40_v17 = vpop.xlane.xlu1 %39 }
 0x126   :  { %v44_v18 = vmul.f32 0.03125, %v40_v17 }
 0x128   :  { %v46_v19 = vadd.f32 1e-06, %v44_v18 }
 0x129   :  { %v43_v20 = vpop.xlane.xlu1 %42 }
 0x12a   :  { %179 = vrsqrt.f32 %v46_v19  ;;  %v45_v21 = vmul.f32 0.03125, %v43_v20 }
 0x12c   :  { %v47_v22 = vadd.f32 1e-06, %v45_v21 }
 0x12e   :  { %181 = vrsqrt.f32 %v47_v22 }
 0x134   :  { %v180_v23 = vpop.eup %179 }
 0x135   :  { %v50_v24 = vmul.f32 %v180_v23, %v34_v6 }
 0x137   :  { %v59_v28 = vmul.f32 %v154_v25, %v50_v24 }
 0x138   :  { %v182_v26 = vpop.eup %181 }
 0x139   :  { %v51_v27 = vmul.f32 %v182_v26, %v35_v10  ;;  %v68_v31 = vadd.f32 %v155_v29, %v59_v28 }
 0x13b   :  { %v60_v30 = vmul.f32 %v154_v25, %v51_v27 }
 0x13d   :  { %v69_v32 = vadd.f32 %v155_v29, %v60_v30 }
 0x13f   :  { %v70_v33 = vpack.c.bf16 %v69_v32, %v68_v31 }
 0x141   :  { %172 = vmatmul.mubr.msk.bf16.vlgmr.msra.gmra.mrb[0].mxu0 %vm23_vm0, %v70_v33 }
 0x214   :  { %v131_v35 = vpop.f32.mrb[0].mxu0 }
 0x215   :  { %v132_v36 = vadd.f32 %v156_v34, %v131_v35  ;;  %v173_v37 = vpop.f32.mrb[1].mxu0 }
 0x216   :  { %v134_v38 = vpop.f32.mrb[2].mxu0 }
 0x217   :  { %v162_v39 = vpack.c.bf16 %v132_v36, %v132_v36  ;;  %v135_v40 = vadd.f32 %v156_v34, %v134_v38  ;;  %v174_v41 = vpop.f32.mrb[3].mxu0 }
 0x219   :  { %147 = vst.msk [vmem:[%s250_s5] sm:$0xf] %vm146_vm3, %v162_v39  ;;  %v163_v42 = vpack.c.bf16 %v135_v40, %v135_v40 }
 0x21b   :  { %149 = vst.msk [vmem:[%s250_s5 + $0x4] sm:$0x1] %vm148_vm4, %v163_v42 }

// kernel: timm_model_forward.12
= control target key start
LH: loop header
LB: loop body
LE: loop exit
PB: predicated region body
PF: predicated region fallthrough
CT: control target
= control target key end

     0   :  { %vm23_vm0 = vcmask 261120   ;;  %vm27_vm1 = vcmask 254976   ;;  %v203_v15 = vmov 0.0   ;;  %vm204_vm2 = vmmov 0   ;;  %s265_s0 = inlined_call_operand.vmem [shape: f32[10,32], index: 0, kind: input, shape index: {}]   ;;  %s266_s3 = inlined_call_operand.vmem [shape: bf16[32,128], index: 3, kind: input, shape index: {}]   ;;  %s267_s1 = inlined_call_operand.vmem [shape: f32[1,32], index: 1, kind: input, shape index: {}]   ;;  %s268_s2 = inlined_call_operand.vmem [shape: f32[1,32], index: 2, kind: input, shape index: {}]   ;;  %s269_s4 = inlined_call_operand.vmem [shape: f32[1,128], index: 4, kind: input, shape index: {}]   ;;  %s270_s5 = inlined_call_operand.vmem [shape: bf16[10,128], index: 5, kind: output, shape index: {}]  }
   0x1   :  { %v21_v0 = vld [vmem:[%s265_s0] sm:$0xff]  ;;  %v22_v1 = vld [vmem:[%s265_s0 + $0x8] sm:$0x3]  ;;  %183 = vmatprep.subr.bf16.mxu0 %v203_v15  ;;  %187 = vmatprep.mubr.msk.bf16.mxu0 %vm204_vm2, %v203_v15 }
   0x2   :  { %v24_v2 = vsel %vm23_vm0, %v21_v0, 0.0  ;;  %v28_v3 = vsel %vm27_vm1, %v22_v1, 0.0  ;;  %v193_v14 = vld [vmem:[%s266_s3] sm:$0xff]   ;;  %v194_v16 = vld [vmem:[%s266_s3 + $0x8] sm:$0xff]  }
   0x3   :  { %25 = vadd.xlane.f32.xlu0 %v24_v2  ;;  %184 = vmatpush3.bf16.msra.mxu0 %v193_v14  ;;  %v170_v25 = vld [vmem:[%s267_s1] ss:$0 sm:$0xff] }
   0x4   :  { %185 = vmatprep.subr.bf16.mxu0 %v203_v15  ;;  %v171_v29 = vld [vmem:[%s268_s2] ss:$0 sm:$0xff] }
   0x5   :  { %v172_v34 = vld [vmem:[%s269_s4] ss:$0 sm:$0xff] }
   0x7   :  { %29 = vadd.xlane.f32.xlu0 %v28_v3  ;;  %186 = vmatpush3.bf16.msra.mxu0 %v194_v16 }
  0x90   :  { %v26_v4 = vpop.xlane.xlu0 %25 }
  0x91   :  { %v32_v5 = vmul.f32 0.03125, %v26_v4 }
  0x93   :  { %v34_v6 = vsub.f32 %v21_v0, %v32_v5 }
  0x94   :  { %v30_v7 = vpop.xlane.xlu0 %29 }
  0x95   :  { %v33_v8 = vmul.f32 0.03125, %v30_v7  ;;  %v36_v9 = vmul.f32 %v34_v6, %v34_v6 }
  0x97   :  { %v35_v10 = vsub.f32 %v22_v1, %v33_v8  ;;  %v38_v11 = vsel %vm23_vm0, %v36_v9, 0.0 }
  0x98   :  { %39 = vadd.xlane.f32.xlu1 %v38_v11 }
  0x99   :  { %v37_v12 = vmul.f32 %v35_v10, %v35_v10 }
  0x9b   :  { %v41_v13 = vsel %vm27_vm1, %v37_v12, 0.0 }
  0x9c   :  { %42 = vadd.xlane.f32.xlu1 %v41_v13 }
 0x125   :  { %v40_v17 = vpop.xlane.xlu1 %39 }
 0x126   :  { %v44_v18 = vmul.f32 0.03125, %v40_v17 }
 0x128   :  { %v46_v19 = vadd.f32 1e-06, %v44_v18 }
 0x129   :  { %v43_v20 = vpop.xlane.xlu1 %42 }
 0x12a   :  { %195 = vrsqrt.f32 %v46_v19  ;;  %v45_v21 = vmul.f32 0.03125, %v43_v20 }
 0x12c   :  { %v47_v22 = vadd.f32 1e-06, %v45_v21 }
 0x12e   :  { %197 = vrsqrt.f32 %v47_v22 }
 0x134   :  { %v196_v23 = vpop.eup %195 }
 0x135   :  { %v50_v24 = vmul.f32 %v196_v23, %v34_v6 }
 0x137   :  { %v59_v28 = vmul.f32 %v170_v25, %v50_v24 }
 0x138   :  { %v198_v26 = vpop.eup %197 }
 0x139   :  { %v51_v27 = vmul.f32 %v198_v26, %v35_v10  ;;  %v68_v31 = vadd.f32 %v171_v29, %v59_v28 }
 0x13b   :  { %v60_v30 = vmul.f32 %v170_v25, %v51_v27 }
 0x13d   :  { %v69_v32 = vadd.f32 %v171_v29, %v60_v30 }
 0x13f   :  { %v70_v33 = vpack.c.bf16 %v69_v32, %v68_v31 }
 0x141   :  { %188 = vmatmul.mubr.msk.bf16.vlgmr.msra.gmra.mrb[0].mxu0 %vm23_vm0, %v70_v33 }
 0x214   :  { %v131_v35 = vpop.f32.mrb[0].mxu0 }
 0x215   :  { %v132_v36 = vadd.f32 %v172_v34, %v131_v35  ;;  %v189_v37 = vpop.f32.mrb[1].mxu0 }
 0x216   :  { %v134_v38 = vpop.f32.mrb[2].mxu0 }
 0x217   :  { %v140_v39 = vmul.f32 0.044715, %v132_v36  ;;  %v135_v40 = vadd.f32 %v172_v34, %v134_v38  ;;  %v190_v41 = vpop.f32.mrb[3].mxu0  ;;  %v138_v52 = vmul.f32 0.5, %v132_v36 }
 0x219   :  { %v142_v42 = vmul.f32 %v140_v39, %v132_v36  ;;  %v141_v43 = vmul.f32 0.044715, %v135_v40  ;;  %v139_v56 = vmul.f32 0.5, %v135_v40 }
 0x21b   :  { %v144_v44 = vmul.f32 %v142_v42, %v132_v36  ;;  %v143_v45 = vmul.f32 %v141_v43, %v135_v40 }
 0x21d   :  { %v146_v46 = vadd.f32 %v144_v44, %v132_v36  ;;  %v145_v47 = vmul.f32 %v143_v45, %v135_v40 }
 0x21f   :  { %v148_v48 = vmul.f32 0.7978846, %v146_v46  ;;  %v147_v49 = vadd.f32 %v145_v47, %v135_v40 }
 0x221   :  { %199 = vtanh.f32 %v148_v48  ;;  %v149_v50 = vmul.f32 0.7978846, %v147_v49 }
 0x223   :  { %201 = vtanh.f32 %v149_v50 }
 0x22b   :  { %v200_v51 = vpop.eup %199 }
 0x22c   :  { %v152_v53 = vadd.f32 1.0, %v200_v51 }
 0x22d   :  { %v202_v54 = vpop.eup %201 }
 0x22e   :  { %v154_v55 = vmul.f32 %v152_v53, %v138_v52  ;;  %v153_v57 = vadd.f32 1.0, %v202_v54 }
 0x230   :  { %v178_v58 = vpack.c.bf16 %v154_v55, %v154_v55  ;;  %v155_v59 = vmul.f32 %v153_v57, %v139_v56 }
 0x232   :  { %164 = vst [vmem:[%s270_s5] sm:$0xf] %v178_v58  ;;  %v179_v60 = vpack.c.bf16 %v155_v59, %v155_v59 }
 0x234   :  { %165 = vst [vmem:[%s270_s5 + $0x4] sm:$0x1] %v179_v60 }

// kernel: timm_model_forward.9
= control target key start
LH: loop header
LB: loop body
LE: loop exit
PB: predicated region body
PF: predicated region fallthrough
CT: control target
= control target key end

     0   :  { %vm550_vm0 = vcmask 261120   ;;  %s910_s1 = inlined_call_operand.vmem [shape: bf16[768,32], index: 1, kind: input, shape index: {}]   ;;  %s911_s0 = inlined_call_operand.vmem [shape: bf16[8,768], index: 0, kind: input, shape index: {}]   ;;  %s912_s2 = inlined_call_operand.vmem [shape: f32[1,32], index: 2, kind: input, shape index: {}]   ;;  %s913_s3 = inlined_call_operand.vmem [shape: f32[8,32], index: 3, kind: output, shape index: {}]  }
   0x1   :  { %v677_v0 = vld [vmem:[%s910_s1 + $0x40] sm:$0xff]   ;;  %v681_v4 = vld [vmem:[%s910_s1 + $0x48] sm:$0xff]   ;;  %v685_v8 = vld [vmem:[%s910_s1 + $0x50] sm:$0xff]  }
   0x2   :  { %v678_v1 = vld [vmem:[%s910_s1] sm:$0xff]   ;;  %611 = vmatprep.subr.bf16.mxu0 %v677_v0  ;;  %v682_v5 = vld [vmem:[%s910_s1 + $0x8] sm:$0xff]   ;;  %v686_v9 = vld [vmem:[%s910_s1 + $0x10] sm:$0xff]  }
   0x3   :  { %v679_v2 = vld [vmem:[%s910_s1 + $0xc0] sm:$0xff]   ;;  %612 = vmatpush3.bf16.msra.mxu0 %v678_v1  ;;  %v683_v6 = vld [vmem:[%s910_s1 + $0xc8] sm:$0xff]   ;;  %v687_v10 = vld [vmem:[%s910_s1 + $0xd0] sm:$0xff]  }
   0x4   :  { %v680_v3 = vld [vmem:[%s910_s1 + $0x80] sm:$0xff]   ;;  %633 = vmatprep.subr.bf16.mxu1 %v679_v2  ;;  %613 = vmatprep.subr.bf16.mxu0 %v681_v4  ;;  %v684_v7 = vld [vmem:[%s910_s1 + $0x88] sm:$0xff]   ;;  %v688_v11 = vld [vmem:[%s910_s1 + $0x90] sm:$0xff]  }
   0x5   :  { %634 = vmatpush3.bf16.msra.mxu1 %v680_v3  ;;  %v689_v12 = vld [vmem:[%s910_s1 + $0x58] sm:$0xff]   ;;  %v693_v16 = vld [vmem:[%s910_s1 + $0x60] sm:$0xff]   ;;  %v697_v20 = vld [vmem:[%s910_s1 + $0x68] sm:$0xff]  }
   0x6   :  { %635 = vmatprep.subr.bf16.mxu1 %v683_v6  ;;  %v690_v13 = vld [vmem:[%s910_s1 + $0x18] sm:$0xff]   ;;  %v694_v17 = vld [vmem:[%s910_s1 + $0x20] sm:$0xff]   ;;  %v698_v21 = vld [vmem:[%s910_s1 + $0x28] sm:$0xff]  }
   0x7   :  { %614 = vmatpush3.bf16.msra.mxu0 %v682_v5  ;;  %v691_v14 = vld [vmem:[%s910_s1 + $0xd8] sm:$0xff]   ;;  %v695_v18 = vld [vmem:[%s910_s1 + $0xe0] sm:$0xff]   ;;  %v699_v22 = vld [vmem:[%s910_s1 + $0xe8] sm:$0xff]  }
   0x8   :  { %615 = vmatprep.subr.bf16.mxu0 %v685_v8  ;;  %v692_v15 = vld [vmem:[%s910_s1 + $0x98] sm:$0xff]   ;;  %v696_v19 = vld [vmem:[%s910_s1 + $0xa0] sm:$0xff]   ;;  %v700_v23 = vld [vmem:[%s910_s1 + $0xa8] sm:$0xff]  }
   0x9   :  { %636 = vmatpush3.bf16.msra.mxu1 %v684_v7  ;;  %v701_v24 = vld [vmem:[%s910_s1 + $0x70] sm:$0xff]   ;;  %v705_v28 = vld [vmem:[%s910_s1 + $0x78] sm:$0xff]   ;;  %v15_v31 = vld [vmem:[%s911_s0] sm:$0xff] }
   0xa   :  { %637 = vmatprep.subr.bf16.mxu1 %v687_v10  ;;  %v702_v25 = vld [vmem:[%s910_s1 + $0x30] sm:$0xff]   ;;  %v706_v29 = vld [vmem:[%s910_s1 + $0x38] sm:$0xff]   ;;  %v557_v32 = vcombine.low %v15_v31, %v15_v31  ;;  %v558_v33 = vcombine.high %v15_v31, %v15_v31  ;;  %v711_v35 = vld [vmem:[%s910_s1 + $0x140] sm:$0xff]  }
   0xb   :  { %616 = vmatpush3.bf16.msra.mxu0 %v686_v9  ;;  %v703_v26 = vld [vmem:[%s910_s1 + $0xf0] sm:$0xff]   ;;  %v707_v30 = vld [vmem:[%s910_s1 + $0xf8] sm:$0xff]   ;;  %v16_v36 = vld [vmem:[%s911_s0 + $0x8] sm:$0xff] }
   0xc   :  { %617 = vmatprep.subr.bf16.mxu0 %v689_v12  ;;  %v704_v27 = vld [vmem:[%s910_s1 + $0xb0] sm:$0xff]   ;;  %v710_v34 = vld [vmem:[%s910_s1 + $0xb8] sm:$0xff]   ;;  %462 = vmatprep.mubr.bf16.mxu0 %v558_v33  ;;  %v559_v37 = vcombine.low %v16_v36, %v16_v36  ;;  %v560_v38 = vcombine.high %v16_v36, %v16_v36  ;;  %v714_v39 = vld [vmem:[%s910_s1 + $0x100] sm:$0xff]  }
   0xd   :  { %638 = vmatpush3.bf16.msra.mxu1 %v688_v11  ;;  %v715_v40 = vld [vmem:[%s910_s1 + $0x148] sm:$0xff]   ;;  %v717_v42 = vld [vmem:[%s910_s1 + $0x150] sm:$0xff]   ;;  %v719_v44 = vld [vmem:[%s910_s1 + $0x158] sm:$0xff]  }
   0xe   :  { %639 = vmatprep.subr.bf16.mxu1 %v691_v14  ;;  %502 = vmatprep.mubr.bf16.mxu1 %v560_v38  ;;  %v716_v41 = vld [vmem:[%s910_s1 + $0x108] sm:$0xff]   ;;  %v718_v43 = vld [vmem:[%s910_s1 + $0x110] sm:$0xff]   ;;  %v720_v45 = vld [vmem:[%s910_s1 + $0x118] sm:$0xff]  }
   0xf   :  { %618 = vmatpush3.bf16.msra.mxu0 %v690_v13  ;;  %v721_v46 = vld [vmem:[%s910_s1 + $0x160] sm:$0xff]   ;;  %v17_v48 = vld [vmem:[%s911_s0 + $0x10] sm:$0xff]  ;;  %v723_v49 = vld [vmem:[%s910_s1 + $0x168] sm:$0xff]  }
  0x10   :  { %619 = vmatprep.subr.bf16.mxu0 %v693_v16  ;;  %v722_v47 = vld [vmem:[%s910_s1 + $0x120] sm:$0xff]   ;;  %v562_v50 = vcombine.high %v17_v48, %v17_v48  ;;  %v724_v51 = vld [vmem:[%s910_s1 + $0x128] sm:$0xff]   ;;  %v725_v52 = vld [vmem:[%s910_s1 + $0x170] sm:$0xff]   ;;  %v561_v56 = vcombine.low %v17_v48, %v17_v48 }
  0x11   :  { %640 = vmatpush3.bf16.msra.mxu1 %v692_v15  ;;  %v726_v53 = vld [vmem:[%s910_s1 + $0x130] sm:$0xff]   ;;  %v727_v54 = vld [vmem:[%s910_s1 + $0x178] sm:$0xff]   ;;  %v556_v58 = vld [vmem:[%s912_s2] ss:$0 sm:$0xff] }
  0x12   :  { %641 = vmatprep.subr.bf16.mxu1 %v695_v18  ;;  %v728_v55 = vld [vmem:[%s910_s1 + $0x138] sm:$0xff]  }
  0x13   :  { %620 = vmatpush3.bf16.msra.mxu0 %v694_v17 }
  0x14   :  { %621 = vmatprep.subr.bf16.mxu0 %v697_v20 }
  0x15   :  { %642 = vmatpush3.bf16.msra.mxu1 %v696_v19 }
  0x16   :  { %643 = vmatprep.subr.bf16.mxu1 %v699_v22 }
  0x17   :  { %622 = vmatpush3.bf16.msra.mxu0 %v698_v21 }
  0x18   :  { %623 = vmatprep.subr.bf16.mxu0 %v701_v24 }
  0x19   :  { %644 = vmatpush3.bf16.msra.mxu1 %v700_v23 }
  0x1a   :  { %645 = vmatprep.subr.bf16.mxu1 %v703_v26 }
  0x1b   :  { %624 = vmatpush3.bf16.msra.mxu0 %v702_v25 }
  0x1c   :  { %625 = vmatprep.subr.bf16.mxu0 %v705_v28 }
  0x1d   :  { %646 = vmatpush3.bf16.msra.mxu1 %v704_v27 }
  0x1e   :  { %647 = vmatprep.subr.bf16.mxu1 %v707_v30 }
  0x1f   :  { %626 = vmatpush3.bf16.msra.mxu0 %v706_v29 }
  0x20   :  { %655 = vmatprep.subr.bf16.mxu0 %v711_v35 }
  0x21   :  { %648 = vmatpush3.bf16.msra.mxu1 %v710_v34 }
  0x22   :  { %463 = vmatmul.mubr.bf16.vlgmr.msra.gmra.mrb[0].mxu0 %v557_v32 }
  0x23   :  { %656 = vmatpush3.bf16.msra.mxu0 %v714_v39  ;;  %542 = vmatprep.mubr.bf16.mxu0 %v562_v50 }
  0x24   :  { %503 = vmatmul.mubr.bf16.vlgmr.msra.gmra.mrb[0].mxu1 %v559_v37  ;;  %657 = vmatprep.subr.bf16.mxu0 %v715_v40 }
  0x27   :  { %658 = vmatpush3.bf16.msra.mxu0 %v716_v41 }
  0x28   :  { %659 = vmatprep.subr.bf16.mxu0 %v717_v42 }
  0x2b   :  { %660 = vmatpush3.bf16.msra.mxu0 %v718_v43 }
  0x2c   :  { %661 = vmatprep.subr.bf16.mxu0 %v719_v44 }
  0x2f   :  { %662 = vmatpush3.bf16.msra.mxu0 %v720_v45 }
  0x30   :  { %663 = vmatprep.subr.bf16.mxu0 %v721_v46 }
  0x33   :  { %664 = vmatpush3.bf16.msra.mxu0 %v722_v47 }
  0x34   :  { %665 = vmatprep.subr.bf16.mxu0 %v723_v49 }
  0x37   :  { %666 = vmatpush3.bf16.msra.mxu0 %v724_v51 }
  0x38   :  { %667 = vmatprep.subr.bf16.mxu0 %v725_v52 }
  0x3b   :  { %668 = vmatpush3.bf16.msra.mxu0 %v726_v53 }
  0x3c   :  { %669 = vmatprep.subr.bf16.mxu0 %v727_v54 }
  0x3f   :  { %670 = vmatpush3.bf16.msra.mxu0 %v728_v55 }
  0x42   :  { %543 = vmatmul.mubr.bf16.vlgmr.msra.gmra.mrb[4].mxu0 %v561_v56 }
  0xf5   :  { %v627_v57 = vpop.f32.mrb[0].mxu0 }
  0xf6   :  { %v628_v59 = vpop.f32.mrb[1].mxu0 }
  0xf7   :  { %v629_v60 = vadd.f32 %v628_v59, %v627_v57  ;;  %v630_v61 = vpop.f32.mrb[2].mxu0  ;;  %v649_v62 = vpop.f32.mrb[0].mxu1 }
  0xf8   :  { %v631_v63 = vpop.f32.mrb[3].mxu0  ;;  %v650_v0 = vpop.f32.mrb[1].mxu1 }
  0xf9   :  { %v465_v1 = vadd.f32 %v629_v60, %v556_v58  ;;  %v651_v2 = vadd.f32 %v650_v0, %v649_v62  ;;  %v652_v3 = vpop.f32.mrb[2].mxu1 }
  0xfa   :  { %v653_v4 = vpop.f32.mrb[3].mxu1 }
  0xfb   :  { %v505_v5 = vadd.f32 %v651_v2, %v465_v1 }
 0x115   :  { %v671_v6 = vpop.f32.mrb[4].mxu0 }
 0x116   :  { %v672_v7 = vpop.f32.mrb[5].mxu0 }
 0x117   :  { %v673_v8 = vadd.f32 %v672_v7, %v671_v6  ;;  %v674_v9 = vpop.f32.mrb[6].mxu0 }
 0x118   :  { %v675_v10 = vpop.f32.mrb[7].mxu0 }
 0x119   :  { %v545_v11 = vadd.f32 %v673_v8, %v505_v5 }
 0x11b   :  { %551 = vst.msk [vmem:[%s913_s3] sm:$0xff] %vm550_vm0, %v545_v11 }

// kernel: timm_model_forward.11
= control target key start
LH: loop header
LB: loop body
LE: loop exit
PB: predicated region body
PF: predicated region fallthrough
CT: control target
= control target key end

     0   :  { %s1259_s21 = smov 0   ;;  %s1373_s0 = inlined_call_operand.vmem [shape: bf16[2,4,5,8], index: 0, kind: input, shape index: {}]   ;;  %s1374_s1 = inlined_call_operand.vmem [shape: bf16[2,4,5,8], index: 1, kind: input, shape index: {}]   ;;  %s1375_s2 = inlined_call_operand.vmem [shape: bf16[2,4,5,8], index: 2, kind: input, shape index: {}]   ;;  %s1376_s3 = inlined_call_operand.vmem [shape: bf16[4,8,32], index: 3, kind: input, shape index: {}]   ;;  %s1377_s4 = inlined_call_operand.vmem [shape: f32[1,32], index: 4, kind: input, shape index: {}]   ;;  %s1378_s5 = inlined_call_operand.vmem [shape: f32[2,5,32], index: 5, kind: input, shape index: {}]   ;;  %s1379_s6 = inlined_call_operand.vmem [shape: f32[2,5,32], index: 6, kind: output, shape index: {}]  }
   0x1 LB: > { %s1043_s22 = sadd.s32 4294967295, %s1219_s21   ;;  %p1047_p0 = scmp.ge.s32.totalorder %s1219_s21, 1  ;;  %s1219_s21 = sphi %s1259_s21, %s16_s21  }
   0x2   : > { %p241_p1 = scmp.lt.s32.totalorder %s1219_s21, 3 }
   0x4   : > { %p242_p2 = pnand %p1047_p0, %p241_p1 }
   0x5   : > { %p284_p3 = scmp.lt.s32.totalorder (!%p242_p2), %s1043_s22, 1  ;;  %v1221_v0 = vmov (!%p242_p2), 0.0   ;;  %vm1222_vm0 = vmmov (!%p242_p2), 0   ;;  %vm320_vm1 = vcmask (!%p242_p2), 64512   ;;  %vm505_vm2 = vcmask (!%p242_p2), 36864  }
   0x6   : > { %245 = sbr.rel (%p242_p2) target bundleno = 1018 (0x3fa), region = 44  ;;  %1101 = vmatprep.subr.bf16.mxu1 (!%p242_p2), %v1221_v0  ;;  %1103 = vmatprep.mubr.msk.bf16.mxu1 (!%p242_p2), %vm1222_vm0, %v1221_v0  ;;  %vm558_vm3 = vcmask (!%p242_p2), 1041408   ;;  %vm559_vm4 = vcmask (!%p242_p2), 1042432   ;;  %v1223_v52 = vmov (!%p242_p2), 65535   ;;  %vm554_vm5 = vcmask (!%p242_p2), 39936  }
   0x7   : > { %1125 = vmatprep.subr.bf16.mxu0 (!%p242_p2), %v1221_v0  ;;  %1127 = vmatprep.mubr.msk.bf16.mxu0 (!%p242_p2), %vm1222_vm0, %v1221_v0  ;;  %v560_v53 = vsel (!%p242_p2), %vm558_vm3, 4294967295, %v1223_v52  ;;  %vm760_vm6 = vcmask (!%p242_p2), 1043456   ;;  %vm952_vm7 = vcmask (!%p242_p2), 258048  }
   0x8   : > { %v561_v56 = vsel (!%p242_p2), %vm559_vm4, %v560_v53, 0 }
   0xd   : > { %s1381_s22 = smov (!%p284_p3, %s1043_s22), 1 }
   0xe   : > { %s1276_s23 = sshll.u32 %s1381_s22, 4  ;;  %s1054_s17 = sshll.u32 %s1381_s22, 3 }
   0xf   : > { %s293_s26 = scalar_lea.vmem %s1374_s1, %s1276_s23  ;;  %s288_s29 = scalar_lea.vmem %s1373_s0, %s1276_s23 }
  0x10   : > { %v312_v1 = vld [vmem:[%s293_s26] sm:$0x7]  ;;  %v313_v3 = vld [vmem:[%s293_s26 + $0x4] sm:$0x7]  ;;  %v314_v6 = vld [vmem:[%s293_s26 + $0x8] sm:$0x7]  ;;  %s298_s8 = scalar_lea.vmem %s1375_s2, %s1276_s23  ;;  %s302_s20 = scalar_lea.vmem %s1378_s5, %s1054_s17 }
  0x11   : > { %v325_v2 = vsel %vm320_vm1, %v312_v1, 0  ;;  %v308_v4 = vld [vmem:[%s288_s29] sm:$0x7]  ;;  %v371_v5 = vsel %vm320_vm1, %v313_v3, 0  ;;  %v309_v7 = vld [vmem:[%s288_s29 + $0x4] sm:$0x7]  ;;  %s306_s27 = scalar_lea.vmem %s1379_s6, %s1054_s17 }
  0x12   : > { %1102 = vmatpush3.bf16.xpose.msra.mxu1 %v325_v2  ;;  %v417_v8 = vsel %vm320_vm1, %v314_v6, 0  ;;  %v315_v9 = vld [vmem:[%s293_s26 + $0xc] sm:$0x7]  ;;  %v310_v10 = vld [vmem:[%s288_s29 + $0x8] sm:$0x7] }
  0x13   : > { %1107 = vmatprep.subr.bf16.mxu1 %v1221_v0  ;;  %v463_v11 = vsel %vm320_vm1, %v315_v9, 0  ;;  %v311_v12 = vld [vmem:[%s288_s29 + $0xc] sm:$0x7]  ;;  %v316_v55 = vld [vmem:[%s298_s8] sm:$0x7] }
  0x14   : > { %v563_v57 = vand.u32 %v561_v56, %v316_v55  ;;  %v317_v58 = vld [vmem:[%s298_s8 + $0x4] sm:$0x7]  ;;  %v318_v60 = vld [vmem:[%s298_s8 + $0x8] sm:$0x7]  ;;  %v319_v62 = vld [vmem:[%s298_s8 + $0xc] sm:$0x7] }
  0x15   : > { %v609_v59 = vand.u32 %v561_v56, %v317_v58  ;;  %v655_v61 = vand.u32 %v561_v56, %v318_v60  ;;  %v701_v63 = vand.u32 %v561_v56, %v319_v62 }
  0x16   : > { %1126 = vmatpush3.bf16.msra.mxu0 %v563_v57 }
  0x17   : > { %1137 = vmatprep.subr.bf16.mxu0 %v1221_v0 }
  0x19   : > { %1104 = vmatmul.mubr.msk.bf16.vlgmr.msra.gmra.mrb[0].mxu1 %vm320_vm1, %v308_v4 }
  0x1a   : > { %1108 = vmatpush3.bf16.xpose.msra.mxu1 %v371_v5  ;;  %1109 = vmatprep.mubr.msk.bf16.mxu1 %vm1222_vm0, %v1221_v0 }
  0x1b   : > { %1113 = vmatprep.subr.bf16.mxu1 %v1221_v0 }
  0x21   : > { %1110 = vmatmul.mubr.msk.bf16.vlgmr.msra.gmra.mrb[4].mxu1 %vm320_vm1, %v309_v7 }
  0x22   : > { %1114 = vmatpush3.bf16.xpose.msra.mxu1 %v417_v8  ;;  %1115 = vmatprep.mubr.msk.bf16.mxu1 %vm1222_vm0, %v1221_v0 }
  0x23   : > { %1119 = vmatprep.subr.bf16.mxu1 %v1221_v0 }
  0x29   : > { %1116 = vmatmul.mubr.msk.bf16.vlgmr.msra.gmra.mrb[8].mxu1 %vm320_vm1, %v310_v10 }
  0x2a   : > { %1120 = vmatpush3.bf16.xpose.msra.mxu1 %v463_v11  ;;  %1121 = vmatprep.mubr.msk.bf16.mxu1 %vm1222_vm0, %v1221_v0 }
  0x2b   : > { %1131 = vmatprep.subr.bf16.mxu1 %v1221_v0 }
  0x31   : > { %1122 = vmatmul.mubr.msk.bf16.vlgmr.msra.gmra.mrb[12].mxu1 %vm320_vm1, %v311_v12  ;;  %v756_v12 = vld [vmem:[%s1376_s3] sm:$0xf] }
  0x32   : > { %1133 = vmatprep.mubr.msk.bf16.mxu1 %vm1222_vm0, %v1221_v0  ;;  %1132 = vmatpush3.bf16.msra.mxu1 %v609_v59 }
  0x33   : > { %1143 = vmatprep.subr.bf16.mxu1 %v1221_v0 }
  0xec   : > { %v361_v13 = vpop.f32.mrb[0].mxu1 }
  0xed   : > { %v1105_v14 = vpop.f32.mrb[1].mxu1  ;;  %v506_v15 = vsel %vm505_vm2, %v361_v13, -inf }
  0xee   : > { %507 = vmax.xlane.f32.xlu0 %v506_v15  ;;  %v364_v16 = vpop.f32.mrb[2].mxu1  ;;  %v762_v15 = vsel %vm760_vm6, %v756_v12, 0 }
  0xef   : > { %v1106_v17 = vpop.f32.mrb[3].mxu1 }
  0xf4   : > { %v407_v18 = vpop.f32.mrb[4].mxu1 }
  0xf5   : > { %v509_v19 = vsel %vm505_vm2, %v407_v18, -inf  ;;  %v1111_v20 = vpop.f32.mrb[5].mxu1 }
  0xf6   : > { %510 = vmax.xlane.f32.xlu0 %v509_v19  ;;  %v410_v21 = vpop.f32.mrb[6].mxu1  ;;  %v1066_v19 = vld [vmem:[%s1376_s3 + $0x4] sm:$0xf] }
  0xf7   : > { %v1112_v22 = vpop.f32.mrb[7].mxu1 }
  0xfc   : > { %v453_v23 = vpop.f32.mrb[8].mxu1 }
  0xfd   : > { %v512_v24 = vsel %vm505_vm2, %v453_v23, -inf  ;;  %v1117_v25 = vpop.f32.mrb[9].mxu1 }
  0xfe   : > { %513 = vmax.xlane.f32.xlu1 %v512_v24  ;;  %v456_v26 = vpop.f32.mrb[10].mxu1 }
  0xff   : > { %v1118_v27 = vpop.f32.mrb[11].mxu1 }
 0x104   : > { %v499_v28 = vpop.f32.mrb[12].mxu1 }
 0x105   : > { %v515_v29 = vsel %vm505_vm2, %v499_v28, -inf  ;;  %v1123_v30 = vpop.f32.mrb[13].mxu1 }
 0x106   : > { %516 = vmax.xlane.f32.xlu1 %v515_v29  ;;  %v502_v31 = vpop.f32.mrb[14].mxu1  ;;  %v1068_v29 = vld [vmem:[%s1376_s3 + $0x8] sm:$0xf] }
 0x107   : > { %v1124_v32 = vpop.f32.mrb[15].mxu1 }
 0x108   : > { %v860_v32 = vsel %vm760_vm6, %v1068_v29, 0 }
 0x17b   : > { %v508_v33 = vpop.xlane.xlu0 %507 }
 0x17c   : > { %v518_v34 = vsub.f32 %v361_v13, %v508_v33 }
 0x17e   : > { %v522_v35 = vmul.f32 1.442695, %v518_v34 }
 0x180   : > { %1197 = vpow2.f32 %v522_v35 }
 0x183   : > { %v511_v36 = vpop.xlane.xlu0 %510 }
 0x184   : > { %v519_v37 = vsub.f32 %v407_v18, %v511_v36 }
 0x186   : > { %v524_v38 = vmul.f32 1.442695, %v519_v37  ;;  %v1070_v37 = vld [vmem:[%s1376_s3 + $0xc] sm:$0xf] }
 0x188   : > { %1199 = vpow2.f32 %v524_v38 }
 0x18a   : > { %v1198_v39 = vpop.eup %1197 }
 0x18b   : > { %v514_v40 = vpop.xlane.xlu1 %513  ;;  %v530_v41 = vsel %vm505_vm2, %v1198_v39, 0.0 }
 0x18c   : > { %v520_v42 = vsub.f32 %v453_v23, %v514_v40  ;;  %531 = vadd.xlane.f32.xlu0 %v530_v41  ;;  %v811_v23 = vsel %vm760_vm6, %v1066_v19, 0  ;;  %v909_v41 = vsel %vm760_vm6, %v1070_v37, 0 }
 0x18e   : > { %v526_v43 = vmul.f32 1.442695, %v520_v42 }
 0x190   : > { %1201 = vpow2.f32 %v526_v43 }
 0x192   : > { %v1200_v44 = vpop.eup %1199 }
 0x193   : > { %v517_v45 = vpop.xlane.xlu1 %516  ;;  %v533_v46 = vsel %vm505_vm2, %v1200_v44, 0.0 }
 0x194   : > { %v521_v47 = vsub.f32 %v499_v28, %v517_v45  ;;  %534 = vadd.xlane.f32.xlu1 %v533_v46  ;;  %v747_v45 = vld [vmem:[%s302_s20] sm:$0x1f] }
 0x195   : > { %v1064_v46 = vld [vmem:[%s1377_s4] ss:$0 sm:$0xff] }
 0x196   : > { %v528_v48 = vmul.f32 1.442695, %v521_v47  ;;  %v755_v47 = vadd.f32 %v1064_v46, %v747_v45 }
 0x198   : > { %1203 = vpow2.f32 %v528_v48 }
 0x19a   : > { %v1202_v49 = vpop.eup %1201 }
 0x19b   : > { %v536_v50 = vsel %vm505_vm2, %v1202_v49, 0.0 }
 0x19c   : > { %537 = vadd.xlane.f32.xlu0 %v536_v50 }
 0x1a2   : > { %v1204_v51 = vpop.eup %1203 }
 0x1a3   : > { %v539_v54 = vsel %vm505_vm2, %v1204_v51, 0.0 }
 0x1a4   : > { %540 = vadd.xlane.f32.xlu1 %v539_v54 }
 0x219   : > { %v532_v1 = vpop.xlane.xlu0 %531 }
 0x21a   : > { %1205 = vrcp.f32 %v532_v1 }
 0x221   : > { %v535_v2 = vpop.xlane.xlu1 %534 }
 0x222   : > { %1207 = vrcp.f32 %v535_v2 }
 0x224   : > { %v1206_v3 = vpop.eup %1205 }
 0x225   : > { %v546_v4 = vmul.f32 %v1206_v3, %v1198_v39 }
 0x227   : > { %v550_v5 = vpack.c.bf16 %v546_v4, %v546_v4 }
 0x229   : > { %1128 = vmatmul.mubr.msk.bf16.vlgmr.msra.gmra.mrb[0].mxu0 %vm554_vm5, %v550_v5  ;;  %v538_v6 = vpop.xlane.xlu0 %537 }
 0x22a   : > { %1209 = vrcp.f32 %v538_v6  ;;  %1138 = vmatpush3.bf16.msra.mxu0 %v655_v61  ;;  %1139 = vmatprep.mubr.msk.bf16.mxu0 %vm1222_vm0, %v1221_v0 }
 0x22b   : > { %1149 = vmatprep.subr.bf16.mxu0 %v1221_v0 }
 0x22c   : > { %v1208_v7 = vpop.eup %1207 }
 0x22d   : > { %v547_v8 = vmul.f32 %v1208_v7, %v1200_v44 }
 0x22f   : > { %v551_v9 = vpack.c.bf16 %v547_v8, %v547_v8 }
 0x231   : > { %1134 = vmatmul.mubr.msk.bf16.vlgmr.msra.gmra.mrb[16].mxu1 %vm554_vm5, %v551_v9  ;;  %v541_v10 = vpop.xlane.xlu1 %540 }
 0x232   : > { %1211 = vrcp.f32 %v541_v10  ;;  %1144 = vmatpush3.bf16.msra.mxu1 %v701_v63  ;;  %1145 = vmatprep.mubr.msk.bf16.mxu1 %vm1222_vm0, %v1221_v0 }
 0x234   : > { %v1210_v11 = vpop.eup %1209 }
 0x235   : > { %v548_v13 = vmul.f32 %v1210_v11, %v1202_v49 }
 0x237   : > { %v552_v14 = vpack.c.bf16 %v548_v13, %v548_v13 }
 0x239   : > { %1140 = vmatmul.mubr.msk.bf16.vlgmr.msra.gmra.mrb[4].mxu0 %vm554_vm5, %v552_v14 }
 0x23a   : > { %1150 = vmatpush3.bf16.msra.mxu0 %v762_v15  ;;  %1151 = vmatprep.mubr.msk.bf16.mxu0 %vm1222_vm0, %v1221_v0 }
 0x23b   : > { %1155 = vmatprep.subr.bf16.mxu0 %v1221_v0 }
 0x23c   : > { %v1212_v16 = vpop.eup %1211 }
 0x23d   : > { %v549_v17 = vmul.f32 %v1212_v16, %v1204_v51 }
 0x23f   : > { %v553_v18 = vpack.c.bf16 %v549_v17, %v549_v17 }
 0x241   : > { %1146 = vmatmul.mubr.msk.bf16.vlgmr.msra.gmra.mrb[20].mxu1 %vm554_vm5, %v553_v18 }
 0x2fc   : > { %v599_v20 = vpop.f32.mrb[0].mxu0 }
 0x2fd   : > { %v743_v21 = vpack.c.bf16 %v599_v20, %v599_v20  ;;  %v1129_v22 = vpop.f32.mrb[1].mxu0 }
 0x2fe   : > { %v602_v24 = vpop.f32.mrb[2].mxu0 }
 0x2ff   : > { %v1130_v25 = vpop.f32.mrb[3].mxu0  ;;  %1152 = vmatmul.mubr.msk.bf16.vlgmr.msra.gmra.mrb[8].mxu0 %vm320_vm1, %v743_v21 }
 0x300   : > { %1156 = vmatpush3.bf16.msra.mxu0 %v811_v23  ;;  %1157 = vmatprep.mubr.msk.bf16.mxu0 %vm1222_vm0, %v1221_v0 }
 0x301   : > { %1161 = vmatprep.subr.bf16.mxu0 %v1221_v0 }
 0x304   : > { %v645_v26 = vpop.f32.mrb[16].mxu1 }
 0x305   : > { %v1135_v27 = vpop.f32.mrb[17].mxu1  ;;  %v744_v31 = vpack.c.bf16 %v645_v26, %v645_v26 }
 0x306   : > { %v648_v28 = vpop.f32.mrb[18].mxu1 }
 0x307   : > { %v1136_v30 = vpop.f32.mrb[19].mxu1 }
 0x30b   : > { %1158 = vmatmul.mubr.msk.bf16.vlgmr.msra.gmra.mrb[8].mxu0 %vm320_vm1, %v744_v31 }
 0x30c   : > { %1162 = vmatpush3.bf16.msra.mxu0 %v860_v32  ;;  %v691_v33 = vpop.f32.mrb[4].mxu0  ;;  %1163 = vmatprep.mubr.msk.bf16.mxu0 %vm1222_vm0, %v1221_v0 }
 0x30d   : > { %v1141_v34 = vpop.f32.mrb[5].mxu0  ;;  %1167 = vmatprep.subr.bf16.mxu0 %v1221_v0  ;;  %v745_v39 = vpack.c.bf16 %v691_v33, %v691_v33 }
 0x30e   : > { %v694_v35 = vpop.f32.mrb[6].mxu0 }
 0x30f   : > { %v1142_v36 = vpop.f32.mrb[7].mxu0 }
 0x314   : > { %v737_v38 = vpop.f32.mrb[20].mxu1 }
 0x315   : > { %v1147_v40 = vpop.f32.mrb[21].mxu1  ;;  %v746_v44 = vpack.c.bf16 %v737_v38, %v737_v38 }
 0x316   : > { %v740_v42 = vpop.f32.mrb[22].mxu1 }
 0x317   : > { %v1148_v43 = vpop.f32.mrb[23].mxu1  ;;  %1164 = vmatmul.mubr.msk.bf16.vlgmr.msra.gmra.mrb[8].mxu0 %vm320_vm1, %v745_v39 }
 0x318   : > { %1168 = vmatpush3.bf16.msra.mxu0 %v909_v41  ;;  %1169 = vmatprep.mubr.msk.bf16.mxu0 %vm1222_vm0, %v1221_v0 }
 0x323   : > { %1170 = vmatmul.mubr.msk.bf16.vlgmr.msra.gmra.mrb[8].mxu0 %vm320_vm1, %v746_v44 }
 0x3f6   : > { %v945_v48 = vpop.f32.mrb[8].mxu0 }
 0x3f7   : > { %v1173_v0 = vadd.f32 %v945_v48, %v755_v47  ;;  %v1171_v49 = vpop.f32.mrb[9].mxu0 }
 0x3f8   : > { %v948_v50 = vpop.f32.mrb[10].mxu0 }
 0x3f9   : > { %953 = vst.msk [vmem:[%s306_s27] sm:$0x1f] %vm952_vm7, %v1173_v0  ;;  %v1172_v51 = vpop.f32.mrb[11].mxu0 }
 0x3fa PF: > { %s16_s21 = sadd.s32 1, %s1219_s21  }
 0x3fb   : > { %p13_p4 = scmp.ge.s32.totalorder %s16_s21, 4  }
 0x3fd   :  { %15 = sbr.rel (!%p13_p4) target bundleno = 1 (0x1), region = 86 }

// kernel: timm_model_forward.13
= control target key start
LH: loop header
LB: loop body
LE: loop exit
PB: predicated region body
PF: predicated region fallthrough
CT: control target
= control target key end

     0   :  { %v200_v0 = vmov 0.0   ;;  %vm201_vm0 = vmmov 0   ;;  %vm142_vm1 = vcmask 261120   ;;  %vm144_vm2 = vcmask 254976   ;;  %s269_s1 = inlined_call_operand.vmem [shape: bf16[128,32], index: 1, kind: input, shape index: {}]   ;;  %s270_s0 = inlined_call_operand.vmem [shape: bf16[10,128], index: 0, kind: input, shape index: {}]   ;;  %s271_s2 = inlined_call_operand.vmem [shape: f32[1,32], index: 2, kind: input, shape index: {}]   ;;  %s272_s3 = inlined_call_operand.vmem [shape: f32[10,32], index: 3, kind: input, shape index: {}]   ;;  %s273_s4 = inlined_call_operand.vmem [shape: f32[10,32], index: 4, kind: output, shape index: {}]  }
   0x1   :  { %169 = vmatprep.subr.bf16.mxu0 %v200_v0  ;;  %v191_v1 = vld [vmem:[%s269_s1] sm:$0xff]   ;;  %185 = vmatprep.mubr.msk.bf16.mxu0 %vm201_vm0, %v200_v0  ;;  %v192_v2 = vld [vmem:[%s269_s1 + $0x8] sm:$0xff]   ;;  %v193_v3 = vld [vmem:[%s269_s1 + $0x10] sm:$0xff]  }
   0x2   :  { %170 = vmatpush3.bf16.msra.mxu0 %v191_v1  ;;  %v194_v4 = vld [vmem:[%s269_s1 + $0x18] sm:$0xff]   ;;  %v195_v5 = vld [vmem:[%s269_s1 + $0x20] sm:$0xff]   ;;  %v196_v6 = vld [vmem:[%s269_s1 + $0x28] sm:$0xff]  }
   0x3   :  { %171 = vmatprep.subr.bf16.mxu0 %v200_v0  ;;  %v197_v7 = vld [vmem:[%s269_s1 + $0x30] sm:$0xff]   ;;  %v198_v8 = vld [vmem:[%s269_s1 + $0x38] sm:$0xff]   ;;  %v199_v9 = vld [vmem:[%s270_s0] sm:$0x1f]  }
   0x4   :  { %v150_v10 = vld [vmem:[%s271_s2] ss:$0 sm:$0xff]  ;;  %v139_v16 = vld [vmem:[%s272_s3 + $0x8] sm:$0x3] }
   0x5   :  { %v138_v12 = vld [vmem:[%s272_s3] sm:$0xff] }
   0x6   :  { %172 = vmatpush3.bf16.msra.mxu0 %v192_v2 }
   0x7   :  { %173 = vmatprep.subr.bf16.mxu0 %v200_v0 }
   0xa   :  { %174 = vmatpush3.bf16.msra.mxu0 %v193_v3 }
   0xb   :  { %175 = vmatprep.subr.bf16.mxu0 %v200_v0 }
   0xe   :  { %176 = vmatpush3.bf16.msra.mxu0 %v194_v4 }
   0xf   :  { %177 = vmatprep.subr.bf16.mxu0 %v200_v0 }
  0x12   :  { %178 = vmatpush3.bf16.msra.mxu0 %v195_v5 }
  0x13   :  { %179 = vmatprep.subr.bf16.mxu0 %v200_v0 }
  0x16   :  { %180 = vmatpush3.bf16.msra.mxu0 %v196_v6 }
  0x17   :  { %181 = vmatprep.subr.bf16.mxu0 %v200_v0 }
  0x1a   :  { %182 = vmatpush3.bf16.msra.mxu0 %v197_v7 }
  0x1b   :  { %183 = vmatprep.subr.bf16.mxu0 %v200_v0 }
  0x1e   :  { %184 = vmatpush3.bf16.msra.mxu0 %v198_v8 }
  0x21   :  { %186 = vmatmul.mubr.bf16.vlgmr.msra.gmra.mrb[0].mxu0 %v199_v9 }
  0xf4   :  { %v131_v11 = vpop.f32.mrb[0].mxu0 }
  0xf5   :  { %v132_v13 = vadd.f32 %v150_v10, %v131_v11  ;;  %v187_v14 = vpop.f32.mrb[1].mxu0 }
  0xf6   :  { %v134_v15 = vpop.f32.mrb[2].mxu0 }
  0xf7   :  { %v140_v17 = vadd.f32 %v138_v12, %v132_v13  ;;  %v135_v18 = vadd.f32 %v150_v10, %v134_v15  ;;  %v188_v19 = vpop.f32.mrb[3].mxu0 }
  0xf9   :  { %143 = vst.msk [vmem:[%s273_s4] sm:$0xff] %vm142_vm1, %v140_v17  ;;  %v141_v20 = vadd.f32 %v139_v16, %v135_v18 }
  0xfb   :  { %145 = vst.msk [vmem:[%s273_s4 + $0x8] sm:$0x3] %vm144_vm2, %v141_v20 }

</bundles_post_ra>
